<compile_context>
chip_gen: v5e
topology: v5e:2x2
jax: 0.10.0
libtpu: 0.0.40
codegen_flags: <defaults>
</compile_context>

<pallas_src>
import math

import jax
import jax.numpy as jnp
from jax.experimental import pallas as pl
from jax.experimental.pallas import tpu as pltpu


def _embedding_kernel(x_ref, w1_ref, b1_ref, w2_ref, b2_ref, w3_ref, b3_ref,
                      wf_ref, peb_ref, out_ref, exp_ref):
    Bt, T, _ = x_ref.shape
    F = w3_ref.shape[1]
    M = wf_ref.shape[1]
    BT = Bt * T

    # ---- conv1: Conv1d(1 -> 128, k=7, pad=3) + ReLU as (Bt*T, 8)@(8, 128) ---
    h1 = jnp.dot(x_ref[...].reshape(BT, 8), w1_ref[...],
                 preferred_element_type=jnp.float32) + b1_ref[...]
    h1 = jnp.maximum(h1, 0.0).astype(jnp.bfloat16)                    # (BT, 128)

    # ---- conv2: Conv1d(128 -> 256, k=5, pad=2) + ReLU ------------------------
    # im2col tap columns built once for the whole (Bt, T) block.
    h1b = h1.reshape(Bt, T, 128)
    zp2 = jnp.zeros((Bt, 2, 128), jnp.bfloat16)
    h1p = jnp.concatenate([zp2, h1b, zp2], axis=1)                    # (Bt, T+4, 128)
    cols2 = jnp.concatenate([h1p[:, k:k + T, :] for k in range(5)],
                            axis=2).reshape(BT, 5 * 128)              # (BT, 640)
    h2 = jnp.dot(cols2, w2_ref[...],
                 preferred_element_type=jnp.float32) + b2_ref[...]
    h2 = jnp.maximum(h2, 0.0).astype(jnp.bfloat16)                    # (BT, 256)

    # ---- conv3 taps (shared by the expand matmul and the fused linear) -------
    h2b = h2.reshape(Bt, T, 256)
    zp3 = jnp.zeros((Bt, 1, 256), jnp.bfloat16)
    h2p = jnp.concatenate([zp3, h2b, zp3], axis=1)                    # (Bt, T+2, 256)
    cols3 = jnp.concatenate([h2p[:, k:k + T, :] for k in range(3)],
                            axis=2).reshape(BT, 3 * 256)              # (BT, 768)

    # expand_tensor = conv3 output (no ReLU), emitted channels-first (Bt, F, T)
    h3 = jnp.dot(cols3, w3_ref[...],
                 preferred_element_type=jnp.float32) + b3_ref[...]    # (BT, F) f32
    exp_ref[...] = jnp.transpose(h3.reshape(Bt, T, F), (0, 2, 1))

    # fused conv3 @ Linear  +  (pos-enc + linear bias + b3 @ wl), then ReLU
    z = jnp.dot(cols3, wf_ref[...], preferred_element_type=jnp.float32)  # (BT, M)
    z = z.reshape(Bt, T, M) + peb_ref[...]
    out_ref[...] = jnp.maximum(z, 0.0)


def position_encoding_table(T, M):
    # matches position_encode() in the PyTorch module (M assumed even)
    position = jnp.arange(T, dtype=jnp.float32)[:, None]                  # (T, 1)
    temp = jnp.exp(jnp.arange(0, M, 2, dtype=jnp.float32)
                   * (-math.log(10000.0) / M))[None, :]                   # (1, M//2)
    ang = position @ temp                                                  # (T, M//2)
    pe = jnp.ones((T, M), jnp.float32)
    pe = pe.at[:, 0::2].set(jnp.sin(ang))
    pe = pe.at[:, 1::2].set(jnp.cos(ang))
    return pe


def init_params(key, d_feature, d_model):
    ks = jax.random.split(key, 8)
    s = 0.1
    # conv weights stored pre-transposed as (K, C_in, C_out); linear as (in, out)
    return {
        "w1": s * jax.random.normal(ks[0], (7, 1, 128), jnp.float32),
        "b1": s * jax.random.normal(ks[1], (1, 128), jnp.float32),
        "w2": s * jax.random.normal(ks[2], (5, 128, 256), jnp.float32),
        "b2": s * jax.random.normal(ks[3], (1, 256), jnp.float32),
        "w3": s * jax.random.normal(ks[4], (3, 256, d_feature), jnp.float32),
        "b3": s * jax.random.normal(ks[5], (1, d_feature), jnp.float32),
        "wl": s * jax.random.normal(ks[6], (d_feature, d_model), jnp.float32),
        "bl": s * jax.random.normal(ks[7], (1, d_model), jnp.float32),
    }


def _pick_block_batch(B, cap=8):
    # Largest divisor of B that (a) keeps the grid >= 2 steps when B >= 2 so
    # the v7x 2-TC runtime can shard the "parallel" axis, and (b) stays under
    # `cap` to bound VMEM (64 MiB on v7x vs 128 MiB on v5e/v6e).
    limit = min(cap, max(1, B // 2))
    bt = 1
    for c in range(1, limit + 1):
        if B % c == 0:
            bt = c
    return bt


def embedding_forward(x, params, d_model, wise="timestep"):
    # TODO(synk): wise='feature' branch (Linear over the timestep axis, no
    # positional encoding) is not implemented; kernel covers wise='timestep'.
    assert wise == "timestep"
    assert d_model % 2 == 0, "position encoding assumes even d_model"
    B, T = x.shape
    F = params["w3"].shape[2]
    M = d_model
    Bt = _pick_block_batch(B)

    # conv1 im2col in the wrapper: (B, T, 8) = 7 shifted taps + one zero column
    xf = x.astype(jnp.float32)
    x_pad = jnp.pad(xf, ((0, 0), (3, 3)))                                 # (B, T+6)
    taps = [x_pad[:, k:k + T] for k in range(7)] + [jnp.zeros_like(xf)]
    x_unf = jnp.stack(taps, axis=-1).astype(jnp.bfloat16)                 # (B, T, 8)

    # flattened / fused bf16 weights (f32 biases, f32 pe + bias constant)
    w1f = jnp.concatenate([params["w1"].reshape(7, 128),
                           jnp.zeros((1, 128), jnp.float32)],
                          axis=0).astype(jnp.bfloat16)                    # (8, 128)
    w2f = params["w2"].reshape(5 * 128, 256).astype(jnp.bfloat16)         # (640, 256)
    w3_f32 = params["w3"].reshape(3 * 256, F)                             # (768, F)
    w3f = w3_f32.astype(jnp.bfloat16)
    # conv3+Linear fusion: precompute w3 @ wl in f32, cast once to bf16
    wfused = (w3_f32 @ params["wl"]).astype(jnp.bfloat16)                 # (768, M)
    # pos-enc + linear bias + (conv3 bias pushed through the linear)
    peb = (position_encoding_table(T, M) + params["bl"]
           + params["b3"] @ params["wl"])                                 # (T, M) f32

    def resident(arr):
        zeros = (0,) * arr.ndim
        return pl.BlockSpec(arr.shape, lambda i, _z=zeros: _z)

    grid_spec = pltpu.PrefetchScalarGridSpec(
        num_scalar_prefetch=0,
        grid=(B // Bt,),
        in_specs=[
            pl.BlockSpec((Bt, T, 8), lambda i: (i, 0, 0)),
            resident(w1f), resident(params["b1"]),
            resident(w2f), resident(params["b2"]),
            resident(w3f), resident(params["b3"]),
            resident(wfused), resident(peb),
        ],
        out_specs=[
            pl.BlockSpec((Bt, T, M), lambda i: (i, 0, 0)),
            pl.BlockSpec((Bt, F, T), lambda i: (i, 0, 0)),
        ],
    )

    out, expand = pl.pallas_call(
        _embedding_kernel,
        out_shape=(jax.ShapeDtypeStruct((B, T, M), jnp.float32),
                   jax.ShapeDtypeStruct((B, F, T), jnp.float32)),
        grid_spec=grid_spec,
        compiler_params=pltpu.CompilerParams(
            dimension_semantics=("parallel",),
            vmem_limit_bytes=32 << 20),
    )(x_unf, w1f, params["b1"], w2f, params["b2"],
      w3f, params["b3"], wfused, peb)

    return out, expand        # expand is already (B, d_feature, T), PyTorch NCL


def _ref_forward(x, params, d_model):
    # pure-JAX f32 reference (same math as the PyTorch module)
    B, T = x.shape

    def conv(h, w, b):                               # h (B,T,Cin), w (K,Cin,Cout)
        K = w.shape[0]
        P = (K - 1) // 2
        hp = jnp.pad(h, ((0, 0), (P, P), (0, 0)))
        out = jnp.zeros((B, T, w.shape[2]), jnp.float32) + b
        for k in range(K):
            out = out + jnp.einsum("bti,io->bto", hp[:, k:k + T, :], w[k],
                                   precision="highest")
        return out

    h = x[:, :, None].astype(jnp.float32)
    h = jax.nn.relu(conv(h, params["w1"], params["b1"]))
    h = jax.nn.relu(conv(h, params["w2"], params["b2"]))
    h3 = conv(h, params["w3"], params["b3"])
    z = jnp.einsum("btf,fm->btm", h3, params["wl"], precision="highest") + params["bl"]
    z = z + position_encoding_table(T, d_model)[None]
    return jax.nn.relu(z), jnp.transpose(h3, (0, 2, 1))


if __name__ == "__main__":
    B, d_timestep, d_feature, d_model = 2, 16, 8, 32

    key = jax.random.PRNGKey(0)
    kx, kp = jax.random.split(key)
    x = jax.random.normal(kx, (B, d_timestep), jnp.float32)
    params = init_params(kp, d_feature, d_model)

    out, expand = embedding_forward(x, params, d_model, wise="timestep")
    jax.block_until_ready((out, expand))

    assert out.shape == (B, d_timestep, d_model)
    assert expand.shape == (B, d_feature, d_timestep)

    out_ref, expand_ref = _ref_forward(x, params, d_model)
    assert bool(jnp.allclose(out, out_ref, rtol=2e-2, atol=2e-2))
    assert bool(jnp.allclose(expand, expand_ref, rtol=2e-2, atol=2e-2))

    print("KERNEL_OK")
</pallas_src>

<mosaic_0001>
module attributes {stable_mosaic.version = 11 : i64} {
  func.func @_embedding_kernel(%arg0: i32, %arg1: memref<1x16x8xbf16, #tpu.memory_space<vmem>>, %arg2: memref<8x128xbf16, #tpu.memory_space<vmem>>, %arg3: memref<1x128xf32, #tpu.memory_space<vmem>>, %arg4: memref<640x256xbf16, #tpu.memory_space<vmem>>, %arg5: memref<1x256xf32, #tpu.memory_space<vmem>>, %arg6: memref<768x8xbf16, #tpu.memory_space<vmem>>, %arg7: memref<1x8xf32, #tpu.memory_space<vmem>>, %arg8: memref<768x32xbf16, #tpu.memory_space<vmem>>, %arg9: memref<16x32xf32, #tpu.memory_space<vmem>>, %arg10: memref<1x16x32xf32, #tpu.memory_space<vmem>>, %arg11: memref<1x8x16xf32, #tpu.memory_space<vmem>>) attributes {dimension_semantics = [#tpu.dimension_semantics<parallel>], iteration_bounds = array<i64: 2>, scalar_prefetch = 0 : i64, scratch_operands = 0 : i64, tpu.core_type = #tpu.core_type<tc>, window_params = [{transform_indices = @transform_0, window_bounds = array<i64: 1, 16, 8>}, {pipeline_mode = #tpu.pipeline_mode<synchronous>, transform_indices = @transform_1, window_bounds = array<i64: 8, 128>}, {pipeline_mode = #tpu.pipeline_mode<synchronous>, transform_indices = @transform_2, window_bounds = array<i64: 1, 128>}, {pipeline_mode = #tpu.pipeline_mode<synchronous>, transform_indices = @transform_3, window_bounds = array<i64: 640, 256>}, {pipeline_mode = #tpu.pipeline_mode<synchronous>, transform_indices = @transform_4, window_bounds = array<i64: 1, 256>}, {pipeline_mode = #tpu.pipeline_mode<synchronous>, transform_indices = @transform_5, window_bounds = array<i64: 768, 8>}, {pipeline_mode = #tpu.pipeline_mode<synchronous>, transform_indices = @transform_6, window_bounds = array<i64: 1, 8>}, {pipeline_mode = #tpu.pipeline_mode<synchronous>, transform_indices = @transform_7, window_bounds = array<i64: 768, 32>}, {pipeline_mode = #tpu.pipeline_mode<synchronous>, transform_indices = @transform_8, window_bounds = array<i64: 16, 32>}, {transform_indices = @transform_9, window_bounds = array<i64: 1, 16, 32>}, {transform_indices = @transform_10, window_bounds = array<i64: 1, 8, 16>}]} {
    %c0 = arith.constant 0 : index
    %c0_0 = arith.constant 0 : index
    %c0_1 = arith.constant 0 : index
    %0 = vector.load %arg1[%c0, %c0_0, %c0_1] : memref<1x16x8xbf16, #tpu.memory_space<vmem>>, vector<1x16x8xbf16>
    %1 = vector.shape_cast %0 : vector<1x16x8xbf16> to vector<16x8xbf16>
    %c0_2 = arith.constant 0 : index
    %c0_3 = arith.constant 0 : index
    %2 = vector.load %arg2[%c0_2, %c0_3] : memref<8x128xbf16, #tpu.memory_space<vmem>>, vector<8x128xbf16>
    %cst = arith.constant dense<0.000000e+00> : vector<16x128xf32>
    %3 = tpu.matmul %1, %2, %cst {dimension_numbers = #tpu.dot_dimension_numbers<[1], [0], [0], [1], [0, 0, 1, 1], [], []>} : vector<16x8xbf16>, vector<8x128xbf16>, vector<16x128xf32> -> vector<16x128xf32>
    %c0_4 = arith.constant 0 : index
    %c0_5 = arith.constant 0 : index
    %4 = vector.load %arg3[%c0_4, %c0_5] : memref<1x128xf32, #tpu.memory_space<vmem>>, vector<1x128xf32>
    %5 = vector.broadcast %4 : vector<1x128xf32> to vector<16x128xf32>
    %6 = arith.addf %3, %5 : vector<16x128xf32>
    %cst_6 = arith.constant 0.000000e+00 : f32
    %7 = vector.broadcast %cst_6 : f32 to vector<16x128xf32>
    %8 = arith.maximumf %6, %7 : vector<16x128xf32>
    %9 = arith.truncf %8 : vector<16x128xf32> to vector<16x128xbf16>
    %10 = vector.shape_cast %9 : vector<16x128xbf16> to vector<1x16x128xbf16>
    %cst_7 = arith.constant 0.000000e+00 : bf16
    %11 = vector.broadcast %cst_7 : bf16 to vector<1x2x128xbf16>
    %12 = tpu.concatenate %11, %10, %11 in 1 : vector<1x2x128xbf16>, vector<1x16x128xbf16>, vector<1x2x128xbf16> -> vector<1x20x128xbf16>
    %13 = vector.extract_strided_slice %12 {offsets = [0, 0, 0], sizes = [1, 16, 128], strides = [1, 1, 1]} : vector<1x20x128xbf16> to vector<1x16x128xbf16>
    %14 = vector.extract_strided_slice %12 {offsets = [0, 1, 0], sizes = [1, 16, 128], strides = [1, 1, 1]} : vector<1x20x128xbf16> to vector<1x16x128xbf16>
    %15 = vector.extract_strided_slice %12 {offsets = [0, 2, 0], sizes = [1, 16, 128], strides = [1, 1, 1]} : vector<1x20x128xbf16> to vector<1x16x128xbf16>
    %16 = vector.extract_strided_slice %12 {offsets = [0, 3, 0], sizes = [1, 16, 128], strides = [1, 1, 1]} : vector<1x20x128xbf16> to vector<1x16x128xbf16>
    %17 = vector.extract_strided_slice %12 {offsets = [0, 4, 0], sizes = [1, 16, 128], strides = [1, 1, 1]} : vector<1x20x128xbf16> to vector<1x16x128xbf16>
    %18 = tpu.concatenate %13, %14, %15, %16, %17 in 2 : vector<1x16x128xbf16>, vector<1x16x128xbf16>, vector<1x16x128xbf16>, vector<1x16x128xbf16>, vector<1x16x128xbf16> -> vector<1x16x640xbf16>
    %19 = vector.shape_cast %18 : vector<1x16x640xbf16> to vector<16x640xbf16>
    %c0_8 = arith.constant 0 : index
    %c0_9 = arith.constant 0 : index
    %20 = vector.load %arg4[%c0_8, %c0_9] : memref<640x256xbf16, #tpu.memory_space<vmem>>, vector<640x256xbf16>
    %cst_10 = arith.constant dense<0.000000e+00> : vector<16x256xf32>
    %21 = tpu.matmul %19, %20, %cst_10 {dimension_numbers = #tpu.dot_dimension_numbers<[1], [0], [0], [1], [0, 0, 1, 1], [], []>} : vector<16x640xbf16>, vector<640x256xbf16>, vector<16x256xf32> -> vector<16x256xf32>
    %c0_11 = arith.constant 0 : index
    %c0_12 = arith.constant 0 : index
    %22 = vector.load %arg5[%c0_11, %c0_12] : memref<1x256xf32, #tpu.memory_space<vmem>>, vector<1x256xf32>
    %23 = vector.broadcast %22 : vector<1x256xf32> to vector<16x256xf32>
    %24 = arith.addf %21, %23 : vector<16x256xf32>
    %cst_13 = arith.constant 0.000000e+00 : f32
    %25 = vector.broadcast %cst_13 : f32 to vector<16x256xf32>
    %26 = arith.maximumf %24, %25 : vector<16x256xf32>
    %27 = arith.truncf %26 : vector<16x256xf32> to vector<16x256xbf16>
    %28 = vector.shape_cast %27 : vector<16x256xbf16> to vector<1x16x256xbf16>
    %cst_14 = arith.constant 0.000000e+00 : bf16
    %29 = vector.broadcast %cst_14 : bf16 to vector<1x1x256xbf16>
    %30 = tpu.concatenate %29, %28, %29 in 1 : vector<1x1x256xbf16>, vector<1x16x256xbf16>, vector<1x1x256xbf16> -> vector<1x18x256xbf16>
    %31 = vector.extract_strided_slice %30 {offsets = [0, 0, 0], sizes = [1, 16, 256], strides = [1, 1, 1]} : vector<1x18x256xbf16> to vector<1x16x256xbf16>
    %32 = vector.extract_strided_slice %30 {offsets = [0, 1, 0], sizes = [1, 16, 256], strides = [1, 1, 1]} : vector<1x18x256xbf16> to vector<1x16x256xbf16>
    %33 = vector.extract_strided_slice %30 {offsets = [0, 2, 0], sizes = [1, 16, 256], strides = [1, 1, 1]} : vector<1x18x256xbf16> to vector<1x16x256xbf16>
    %34 = tpu.concatenate %31, %32, %33 in 2 : vector<1x16x256xbf16>, vector<1x16x256xbf16>, vector<1x16x256xbf16> -> vector<1x16x768xbf16>
    %35 = vector.shape_cast %34 : vector<1x16x768xbf16> to vector<16x768xbf16>
    %c0_15 = arith.constant 0 : index
    %c0_16 = arith.constant 0 : index
    %36 = vector.load %arg6[%c0_15, %c0_16] : memref<768x8xbf16, #tpu.memory_space<vmem>>, vector<768x8xbf16>
    %cst_17 = arith.constant dense<0.000000e+00> : vector<16x8xf32>
    %37 = tpu.matmul %35, %36, %cst_17 {dimension_numbers = #tpu.dot_dimension_numbers<[1], [0], [0], [1], [0, 0, 1, 1], [], []>} : vector<16x768xbf16>, vector<768x8xbf16>, vector<16x8xf32> -> vector<16x8xf32>
    %c0_18 = arith.constant 0 : index
    %c0_19 = arith.constant 0 : index
    %38 = vector.load %arg7[%c0_18, %c0_19] : memref<1x8xf32, #tpu.memory_space<vmem>>, vector<1x8xf32>
    %39 = vector.broadcast %38 : vector<1x8xf32> to vector<16x8xf32>
    %40 = arith.addf %37, %39 : vector<16x8xf32>
    %41 = vector.shape_cast %40 : vector<16x8xf32> to vector<1x16x8xf32>
    %42 = tpu.transpose %41, [0, 2, 1] : vector<1x16x8xf32> -> vector<1x8x16xf32>
    %c0_20 = arith.constant 0 : index
    %c0_21 = arith.constant 0 : index
    %c0_22 = arith.constant 0 : index
    %43 = vector.load %arg11[%c0_20, %c0_21, %c0_22] : memref<1x8x16xf32, #tpu.memory_space<vmem>>, vector<1x8x16xf32>
    tpu.vector_store %arg11[%c0_20, %c0_21, %c0_22], %42 {strides = array<i32>} : memref<1x8x16xf32, #tpu.memory_space<vmem>>, vector<1x8x16xf32>,
    %c0_23 = arith.constant 0 : index
    %c0_24 = arith.constant 0 : index
    %44 = vector.load %arg8[%c0_23, %c0_24] : memref<768x32xbf16, #tpu.memory_space<vmem>>, vector<768x32xbf16>
    %cst_25 = arith.constant dense<0.000000e+00> : vector<16x32xf32>
    %45 = tpu.matmul %35, %44, %cst_25 {dimension_numbers = #tpu.dot_dimension_numbers<[1], [0], [0], [1], [0, 0, 1, 1], [], []>} : vector<16x768xbf16>, vector<768x32xbf16>, vector<16x32xf32> -> vector<16x32xf32>
    %46 = vector.shape_cast %45 : vector<16x32xf32> to vector<1x16x32xf32>
    %c0_26 = arith.constant 0 : index
    %c0_27 = arith.constant 0 : index
    %47 = vector.load %arg9[%c0_26, %c0_27] : memref<16x32xf32, #tpu.memory_space<vmem>>, vector<16x32xf32>
    %48 = vector.shape_cast %47 : vector<16x32xf32> to vector<1x16x32xf32>
    %49 = arith.addf %46, %48 : vector<1x16x32xf32>
    %cst_28 = arith.constant 0.000000e+00 : f32
    %50 = vector.broadcast %cst_28 : f32 to vector<1x16x32xf32>
    %51 = arith.maximumf %49, %50 : vector<1x16x32xf32>
    %c0_29 = arith.constant 0 : index
    %c0_30 = arith.constant 0 : index
    %c0_31 = arith.constant 0 : index
    %52 = vector.load %arg10[%c0_29, %c0_30, %c0_31] : memref<1x16x32xf32, #tpu.memory_space<vmem>>, vector<1x16x32xf32>
    tpu.vector_store %arg10[%c0_29, %c0_30, %c0_31], %51 {strides = array<i32>} : memref<1x16x32xf32, #tpu.memory_space<vmem>>, vector<1x16x32xf32>,
    return
  }
  func.func @transform_0(%arg0: i32) -> (i32, i32, i32) {
    %c0_i32 = arith.constant 0 : i32
    %c0_i32_0 = arith.constant 0 : i32
    %c0_i32_1 = arith.constant 0 : i32
    return %arg0, %c0_i32, %c0_i32_0 : i32, i32, i32
  }
  func.func @transform_1(%arg0: i32) -> (i32, i32) {
    %c0_i32 = arith.constant 0 : i32
    %c0_i32_0 = arith.constant 0 : i32
    %c0_i32_1 = arith.constant 0 : i32
    return %c0_i32, %c0_i32_0 : i32, i32
  }
  func.func @transform_2(%arg0: i32) -> (i32, i32) {
    %c0_i32 = arith.constant 0 : i32
    %c0_i32_0 = arith.constant 0 : i32
    %c0_i32_1 = arith.constant 0 : i32
    return %c0_i32, %c0_i32_0 : i32, i32
  }
  func.func @transform_3(%arg0: i32) -> (i32, i32) {
    %c0_i32 = arith.constant 0 : i32
    %c0_i32_0 = arith.constant 0 : i32
    %c0_i32_1 = arith.constant 0 : i32
    return %c0_i32, %c0_i32_0 : i32, i32
  }
  func.func @transform_4(%arg0: i32) -> (i32, i32) {
    %c0_i32 = arith.constant 0 : i32
    %c0_i32_0 = arith.constant 0 : i32
    %c0_i32_1 = arith.constant 0 : i32
    return %c0_i32, %c0_i32_0 : i32, i32
  }
  func.func @transform_5(%arg0: i32) -> (i32, i32) {
    %c0_i32 = arith.constant 0 : i32
    %c0_i32_0 = arith.constant 0 : i32
    %c0_i32_1 = arith.constant 0 : i32
    return %c0_i32, %c0_i32_0 : i32, i32
  }
  func.func @transform_6(%arg0: i32) -> (i32, i32) {
    %c0_i32 = arith.constant 0 : i32
    %c0_i32_0 = arith.constant 0 : i32
    %c0_i32_1 = arith.constant 0 : i32
    return %c0_i32, %c0_i32_0 : i32, i32
  }
  func.func @transform_7(%arg0: i32) -> (i32, i32) {
    %c0_i32 = arith.constant 0 : i32
    %c0_i32_0 = arith.constant 0 : i32
    %c0_i32_1 = arith.constant 0 : i32
    return %c0_i32, %c0_i32_0 : i32, i32
  }
  func.func @transform_8(%arg0: i32) -> (i32, i32) {
    %c0_i32 = arith.constant 0 : i32
    %c0_i32_0 = arith.constant 0 : i32
    %c0_i32_1 = arith.constant 0 : i32
    return %c0_i32, %c0_i32_0 : i32, i32
  }
  func.func @transform_9(%arg0: i32) -> (i32, i32, i32) {
    %c0_i32 = arith.constant 0 : i32
    %c0_i32_0 = arith.constant 0 : i32
    %c0_i32_1 = arith.constant 0 : i32
    return %arg0, %c0_i32, %c0_i32_0 : i32, i32, i32
  }
  func.func @transform_10(%arg0: i32) -> (i32, i32, i32) {
    %c0_i32 = arith.constant 0 : i32
    %c0_i32_0 = arith.constant 0 : i32
    %c0_i32_1 = arith.constant 0 : i32
    return %arg0, %c0_i32, %c0_i32_0 : i32, i32, i32
  }
}

</mosaic_0001>

<bundles_post_ra>
// kernel: tpu_custom_call.1
= control target key start
LH: loop header
LB: loop body
LE: loop exit
PB: predicated region body
PF: predicated region fallthrough
CT: control target
= control target key end

     0   :  { %s4332_s0 = inlined_call_operand.vmem [shape: bf16[2,16,8], index: 0, kind: input, shape index: {}]   ;;  %s4333_s1 = inlined_call_operand.vmem [shape: bf16[8,128], index: 1, kind: input, shape index: {}]   ;;  %s4334_s2 = inlined_call_operand.vmem [shape: f32[1,128], index: 2, kind: input, shape index: {}]   ;;  %s4335_s3 = inlined_call_operand.vmem [shape: bf16[640,256], index: 3, kind: input, shape index: {}]   ;;  %s4336_s4 = inlined_call_operand.vmem [shape: f32[1,256], index: 4, kind: input, shape index: {}]   ;;  %s4337_s5 = inlined_call_operand.vmem [shape: bf16[768,8], index: 5, kind: input, shape index: {}]   ;;  %s4338_s6 = inlined_call_operand.vmem [shape: f32[1,8], index: 6, kind: input, shape index: {}]   ;;  %s4339_s7 = inlined_call_operand.vmem [shape: bf16[768,32], index: 7, kind: input, shape index: {}]   ;;  %s4340_s8 = inlined_call_operand.vmem [shape: f32[16,32], index: 8, kind: input, shape index: {}]   ;;  %s4341_s9 = inlined_call_operand.hbm [shape: f32[2,16,32], index: 9, kind: output, shape index: {0}]   ;;  %s4342_s10 = inlined_call_operand.hbm [shape: f32[2,8,16], index: 10, kind: output, shape index: {1}]  }
   0x1   :  { %4343 = sst [smem:[#allocation9_spill]] %s4332_s0 }
   0x2   :  { %4344 = sst [smem:[#allocation10_spill]] %s4333_s1 }
   0x3   :  { %4345 = sst [smem:[#allocation11_spill]] %s4334_s2 }
   0x4   :  { %4346 = sst [smem:[#allocation12_spill]] %s4335_s3 }
   0x5   :  { %4347 = sst [smem:[#allocation13_spill]] %s4336_s4 }
   0x6   :  { %16 = vsyncpa [#allocation3], 0 }
   0x7   :  { %18 = vsyncpa [#allocation3 + $0x1], 0 }
   0x8   :  { %19 = vsyncpa [#allocation5], 0 }
   0x9   :  { %21 = vsyncpa [#allocation5 + $0x1], 0  ;;  %s3380_s13 = smov 0   ;;  %s3382_s14 = smov 0  }
   0xa   :  { %s3384_s15 = smov 0   ;;  %s3386_s16 = smov 0  }
   0xb LB: > { %s3401_s17 = sadd.s32 4294967295, %s3321_s16   ;;  %s2271_s18 = sadd.s32 4294967294, %s3321_s16   ;;  %s3321_s16 = sphi %s3386_s16, %s4362_s16   ;;  %s3317_s15 = sphi %s3384_s15, %s4361_s15   ;;  %s3313_s14 = sphi %s3382_s14, %s4360_s14   ;;  %s3309_s13 = sphi %s3380_s13, %s4359_s13  }
   0xc   : > { %s3405_s19 = sadd.s32 1, %s3321_s16   ;;  %s228_s20 = sadd.s32 1, %s3317_s15 }
   0xd   : > { %s225_s21 = ssub.s32 %s3321_s16, %s3405_s19  ;;  %p238_p0 = scmp.ne.s32.totalorder %s3317_s15, %s3313_s14 }
   0xe   : > { %p226_p1 = scmp.eq.s32.totalorder %s225_s21, 0  ;;  %p239_p2 = scmp.eq.s32.totalorder %s3401_s17, 1 }
   0xf   : > { %p244_p3 = scmp.ne.s32.totalorder %s3313_s14, %s3309_s13  ;;  %p245_p4 = scmp.eq.s32.totalorder %s2271_s18, 1 }
  0x10   : > { %s3416_s22 = scalar_select %p226_p1, %s3317_s15, %s228_s20  }
  0x11   : > { %p3418_p5 = por %p239_p2, %p238_p0  ;;  %p3422_p6 = por %p245_p4, %p244_p3 }
  0x12   : > { %4348 = sst [smem:[#allocation8_spill]] %s3416_s22  ;;  %p2274_p7 = scmp.ge.s32.totalorder %s3321_s16, 1 }
  0x13   : > { %p321_p8 = scmp.lt.s32.totalorder %s3321_s16, 3 }
  0x15   : > { %p322_p9 = pnand %p2274_p7, %p321_p8 }
  0x16   : > { %s4351_s1 = sld [smem:[#allocation10_spill]] (!%p322_p9)  ;;  %p364_p10 = scmp.lt.s32.totalorder (!%p322_p9), %s3401_s17, 1 }
  0x17   : > { %325 = sbr.rel (%p322_p9) target bundleno = 698 (0x2ba), region = 56  ;;  %s4352_s3 = sld [smem:[#allocation12_spill]] (!%p322_p9) }
  0x18   : > { %s4353_s0 = sld [smem:[#allocation9_spill]] (!%p322_p9)  ;;  %s4275_s30 = sand.u32 (!%p322_p9), 1, %s3313_s14  }
  0x19   : > { %s4354_s2 = sld [smem:[#allocation11_spill]] (!%p322_p9)  ;;  %s2275_s21 = sshll.u32 (!%p322_p9), %s4275_s30, 4 }
  0x1a   : > { %s4357_s4 = sld [smem:[#allocation13_spill]] (!%p322_p9)  ;;  %s3177_s26 = sshll.u32 (!%p322_p9), %s3401_s17, 4 }
  0x1b   : > { %s2158_s29 = scalar_lea.hbm (!%p322_p9), %s4341_s9, %s3177_s26  ;;  %s2142_s12 = scalar_lea.sflag (!%p322_p9), [#allocation3], %s4275_s30 }
  0x1c   : > { %v372_v0 = vld [vmem:[%s4351_s1] sm:$0xf]  ;;  %vm386_vm0 = vcmask 1043456   ;;  %s365_s11 = scalar_select %p364_p10, %s3401_s17, 1  ;;  %vm382_vm1 = vcmask 64512   ;;  %vm414_vm2 = vcmask 1040384  }
  0x1d   : > { %v388_v1 = vsel %vm386_vm0, %v372_v0, 0  ;;  %v2342_v2 = vld [vmem:[%s4352_s3 + $0x70] sm:$0xf]  ;;  %v3016_v3 = vld [vmem:[%s4352_s3 + $0x74] sm:$0xf0]  ;;  %vm3830_vm3 = vmneg %vm414_vm2  ;;  %vm434_vm4 = vcmask 1046528  }
  0x1e   : > { %397 = vmatpush.bf16.msra.mxu0 %v388_v1  ;;  %v2343_v4 = vor.u32 %v3016_v3, %v2342_v2  ;;  %v2334_v5 = vld [vmem:[%s4352_s3 + $0x60] sm:$0xf]  ;;  %v3014_v6 = vld [vmem:[%s4352_s3 + $0x64] sm:$0xf0]  ;;  %v2406_v7 = vld [vmem:[%s4352_s3 + $0xf0] sm:$0xf] }
  0x1f   : > { %s2999_s27 = sshll.u32 %s365_s11, 3  ;;  %v2335_v8 = vor.u32 %v3014_v6, %v2334_v5  ;;  %v2326_v9 = vld [vmem:[%s4352_s3 + $0x50] sm:$0xf]  ;;  %v3032_v10 = vld [vmem:[%s4352_s3 + $0xf4] sm:$0xf0]  ;;  %vm450_vm7 = vcmask 1045504  }
  0x20   : > { %941 = vmatpush.bf16.msra.mxu1 %v2343_v4  ;;  %s368_s20 = scalar_lea.vmem %s4353_s0, %s2999_s27  ;;  %v3012_v11 = vld [vmem:[%s4352_s3 + $0x54] sm:$0xf0]  ;;  %v2407_v12 = vor.u32 %v3032_v10, %v2406_v7  ;;  %v2398_v13 = vld [vmem:[%s4352_s3 + $0xe0] sm:$0xf]  ;;  %v3030_v14 = vld [vmem:[%s4352_s3 + $0xe4] sm:$0xf0] }
  0x21   : > { %v3000_v15 = vld [vmem:[%s368_s20] sm:$0xff]  ;;  %v2399_v16 = vor.u32 %v3030_v14, %v2398_v13  ;;  %v2470_v17 = vld [vmem:[%s4352_s3 + $0x170] sm:$0xf]  ;;  %v2327_v18 = vor.u32 %v3012_v11, %v2326_v9  ;;  %v3028_v20 = vld [vmem:[%s4352_s3 + $0xd4] sm:$0xf0]  ;;  %vm2138_vm10 = vcmask 261120  }
  0x22   : > { %955 = vmatpush.bf16.msra.mxu2 %v2407_v12  ;;  %2283 = vmatmul.msk.bf16.vlgmr.msra.gmra.mxu0 %vm382_vm1, %v3000_v15  ;;  %v2390_v19 = vld [vmem:[%s4352_s3 + $0xd0] sm:$0xf]  ;;  %v3048_v21 = vld [vmem:[%s4352_s3 + $0x174] sm:$0xf0]  ;;  %v2318_v22 = vld [vmem:[%s4352_s3 + $0x40] sm:$0xf] }
  0x23   : > { %v3010_v23 = vld [vmem:[%s4352_s3 + $0x44] sm:$0xf0]  ;;  %v2471_v24 = vor.u32 %v3048_v21, %v2470_v17  ;;  %v2462_v25 = vld [vmem:[%s4352_s3 + $0x160] sm:$0xf]  ;;  %v2534_v27 = vld [vmem:[%s4352_s3 + $0x1f0] sm:$0xf]  ;;  %v2391_v30 = vor.u32 %v3028_v20, %v2390_v19 }
  0x24   : > { %942 = vmatpush.bf16.msra.mxu1 %v2335_v8  ;;  %v3046_v26 = vld [vmem:[%s4352_s3 + $0x164] sm:$0xf0]  ;;  %v3064_v28 = vld [vmem:[%s4352_s3 + $0x1f4] sm:$0xf0]  ;;  %v2310_v29 = vld [vmem:[%s4352_s3 + $0x30] sm:$0xf]  ;;  %v2319_v34 = vor.u32 %v3010_v23, %v2318_v22 }
  0x25   : > { %969 = vmatpush.bf16.msra.mxu3 %v2471_v24  ;;  %v2382_v31 = vld [vmem:[%s4352_s3 + $0xc0] sm:$0xf]  ;;  %v2463_v32 = vor.u32 %v3046_v26, %v2462_v25  ;;  %v2535_v33 = vor.u32 %v3064_v28, %v2534_v27  ;;  %v3026_v35 = vld [vmem:[%s4352_s3 + $0xc4] sm:$0xf0]  ;;  %v2454_v36 = vld [vmem:[%s4352_s3 + $0x150] sm:$0xf] }
  0x26   : > { %956 = vmatpush.bf16.msra.mxu2 %v2399_v16  ;;  %v3044_v37 = vld [vmem:[%s4352_s3 + $0x154] sm:$0xf0]  ;;  %v2526_v39 = vld [vmem:[%s4352_s3 + $0x1e0] sm:$0xf]  ;;  %v3062_v40 = vld [vmem:[%s4352_s3 + $0x1e4] sm:$0xf0]  ;;  %v2383_v42 = vor.u32 %v3026_v35, %v2382_v31 }
  0x27   : > { %v3008_v38 = vld [vmem:[%s4352_s3 + $0x34] sm:$0xf0]  ;;  %983 = vmatpush.bf16.msrb.mxu0 %v2535_v33  ;;  %v2527_v41 = vor.u32 %v3062_v40, %v2526_v39  ;;  %v2374_v43 = vld [vmem:[%s4352_s3 + $0xb0] sm:$0xf]  ;;  %v2455_v45 = vor.u32 %v3044_v37, %v2454_v36  ;;  %v2446_v48 = vld [vmem:[%s4352_s3 + $0x140] sm:$0xf] }
  0x28   : > { %943 = vmatpush.bf16.msra.mxu1 %v2327_v18  ;;  %v3024_v44 = vld [vmem:[%s4352_s3 + $0xb4] sm:$0xf0]  ;;  %v2518_v46 = vld [vmem:[%s4352_s3 + $0x1d0] sm:$0xf]  ;;  %v2311_v47 = vor.u32 %v3008_v38, %v2310_v29  ;;  %v3042_v49 = vld [vmem:[%s4352_s3 + $0x144] sm:$0xf0] }
  0x29   : > { %970 = vmatpush.bf16.msra.mxu3 %v2463_v32  ;;  %v3060_v50 = vld [vmem:[%s4352_s3 + $0x1d4] sm:$0xf0]  ;;  %v2302_v51 = vld [vmem:[%s4352_s3 + $0x20] sm:$0xf]  ;;  %v3006_v52 = vld [vmem:[%s4352_s3 + $0x24] sm:$0xf0]  ;;  %v2375_v56 = vor.u32 %v3024_v44, %v2374_v43  ;;  %v2447_v59 = vor.u32 %v3042_v49, %v2446_v48 }
  0x2a   : > { %957 = vmatpush.bf16.msra.mxu2 %v2391_v30  ;;  %v2519_v53 = vor.u32 %v3060_v50, %v2518_v46  ;;  %v2510_v54 = vld [vmem:[%s4352_s3 + $0x1c0] sm:$0xf]  ;;  %v3058_v55 = vld [vmem:[%s4352_s3 + $0x1c4] sm:$0xf0]  ;;  %v2303_v60 = vor.u32 %v3006_v52, %v2302_v51  ;;  %v2438_v61 = vld [vmem:[%s4352_s3 + $0x130] sm:$0xf] }
  0x2b   : > { %984 = vmatpush.bf16.msrb.mxu0 %v2527_v41  ;;  %v2366_v57 = vld [vmem:[%s4352_s3 + $0xa0] sm:$0xf]  ;;  %v3022_v58 = vld [vmem:[%s4352_s3 + $0xa4] sm:$0xf0]  ;;  %v3040_v62 = vld [vmem:[%s4352_s3 + $0x134] sm:$0xf0]  ;;  %v2511_v1 = vor.u32 %v3058_v55, %v2510_v54 }
  0x2c   : > { %944 = vmatpush.bf16.msra.mxu1 %v2319_v34  ;;  %v2294_v63 = vld [vmem:[%s4352_s3 + $0x10] sm:$0xf]  ;;  %v3004_v0 = vld [vmem:[%s4352_s3 + $0x14] sm:$0xf0]  ;;  %v2367_v2 = vor.u32 %v3022_v58, %v2366_v57  ;;  %v2439_v3 = vor.u32 %v3040_v62, %v2438_v61  ;;  %v2286_v7 = vld [vmem:[%s4352_s3] sm:$0xf] }
  0x2d   : > { %971 = vmatpush.bf16.msra.mxu3 %v2455_v45  ;;  %v2295_v4 = vor.u32 %v3004_v0, %v2294_v63  ;;  %v2358_v5 = vld [vmem:[%s4352_s3 + $0x90] sm:$0xf]  ;;  %v3020_v6 = vld [vmem:[%s4352_s3 + $0x94] sm:$0xf0]  ;;  %v3002_v8 = vld [vmem:[%s4352_s3 + $0x4] sm:$0xf0] }
  0x2e   : > { %958 = vmatpush.bf16.msra.mxu2 %v2383_v42  ;;  %v2598_v9 = vld [vmem:[%s4352_s3 + $0x270] sm:$0xf]  ;;  %v3080_v10 = vld [vmem:[%s4352_s3 + $0x274] sm:$0xf0]  ;;  %v2359_v11 = vor.u32 %v3020_v6, %v2358_v5  ;;  %v2287_v12 = vor.u32 %v3002_v8, %v2286_v7  ;;  %v2590_v14 = vld [vmem:[%s4352_s3 + $0x260] sm:$0xf] }
  0x2f   : > { %985 = vmatpush.bf16.msrb.mxu0 %v2519_v53  ;;  %v2599_v13 = vor.u32 %v3080_v10, %v2598_v9  ;;  %v3078_v15 = vld [vmem:[%s4352_s3 + $0x264] sm:$0xf0]  ;;  %v2350_v17 = vld [vmem:[%s4352_s3 + $0x80] sm:$0xf]  ;;  %v2502_v22 = vld [vmem:[%s4352_s3 + $0x1b0] sm:$0xf] }
  0x30   : > { %945 = vmatpush.bf16.msra.mxu1 %v2311_v47  ;;  %v2591_v16 = vor.u32 %v3078_v15, %v2590_v14  ;;  %v3018_v18 = vld [vmem:[%s4352_s3 + $0x84] sm:$0xf0]  ;;  %v2430_v20 = vld [vmem:[%s4352_s3 + $0x120] sm:$0xf]  ;;  %v3056_v24 = vld [vmem:[%s4352_s3 + $0x1b4] sm:$0xf0] }
  0x31   : > { %972 = vmatpush.bf16.msra.mxu3 %v2447_v59  ;;  %v2351_v19 = vor.u32 %v3018_v18, %v2350_v17  ;;  %v3038_v21 = vld [vmem:[%s4352_s3 + $0x124] sm:$0xf0]  ;;  %v2582_v25 = vld [vmem:[%s4352_s3 + $0x250] sm:$0xf]  ;;  %v3076_v26 = vld [vmem:[%s4352_s3 + $0x254] sm:$0xf0]  ;;  %v2503_v27 = vor.u32 %v3056_v24, %v2502_v22 }
  0x32   : > { %959 = vmatpush.bf16.msra.mxu2 %v2375_v56  ;;  %v2431_v23 = vor.u32 %v3038_v21, %v2430_v20  ;;  %v2583_v28 = vor.u32 %v3076_v26, %v2582_v25  ;;  %v3015_v29 = vld [vmem:[%s4352_s3 + $0x74] sm:$0xf]  ;;  %v2344_v30 = vld [vmem:[%s4352_s3 + $0x78] sm:$0xf0]  ;;  %v2422_v32 = vld [vmem:[%s4352_s3 + $0x110] sm:$0xf] }
  0x33   : > { %986 = vmatpush.bf16.msrb.mxu0 %v2511_v1  ;;  %v2347_v31 = vor.u32 %v3015_v29, %v2344_v30  ;;  %v3036_v33 = vld [vmem:[%s4352_s3 + $0x114] sm:$0xf0]  ;;  %v2494_v34 = vld [vmem:[%s4352_s3 + $0x1a0] sm:$0xf]  ;;  %v3054_v36 = vld [vmem:[%s4352_s3 + $0x1a4] sm:$0xf0] }
  0x34   : > { %946 = vmatpush.bf16.msra.mxu1 %v2303_v60  ;;  %v2423_v35 = vor.u32 %v3036_v33, %v2422_v32  ;;  %v2574_v37 = vld [vmem:[%s4352_s3 + $0x240] sm:$0xf]  ;;  %v3074_v38 = vld [vmem:[%s4352_s3 + $0x244] sm:$0xf0]  ;;  %v2495_v39 = vor.u32 %v3054_v36, %v2494_v34  ;;  %v3013_v41 = vld [vmem:[%s4352_s3 + $0x64] sm:$0xf] }
  0x35   : > { %973 = vmatpush.bf16.msra.mxu3 %v2439_v3  ;;  %v2575_v40 = vor.u32 %v3074_v38, %v2574_v37  ;;  %v2336_v42 = vld [vmem:[%s4352_s3 + $0x68] sm:$0xf0]  ;;  %v2414_v44 = vld [vmem:[%s4352_s3 + $0x100] sm:$0xf]  ;;  %v3034_v45 = vld [vmem:[%s4352_s3 + $0x104] sm:$0xf0] }
  0x36   : > { %960 = vmatpush.bf16.msra.mxu2 %v2367_v2  ;;  %v2339_v43 = vor.u32 %v3013_v41, %v2336_v42  ;;  %v2486_v46 = vld [vmem:[%s4352_s3 + $0x190] sm:$0xf]  ;;  %v2415_v47 = vor.u32 %v3034_v45, %v2414_v44  ;;  %v3052_v48 = vld [vmem:[%s4352_s3 + $0x194] sm:$0xf0]  ;;  %v3011_v53 = vld [vmem:[%s4352_s3 + $0x54] sm:$0xf] }
  0x37   : > { %987 = vmatpush.bf16.msrb.mxu0 %v2503_v27  ;;  %v2566_v49 = vld [vmem:[%s4352_s3 + $0x230] sm:$0xf]  ;;  %v3072_v50 = vld [vmem:[%s4352_s3 + $0x234] sm:$0xf0]  ;;  %v2487_v51 = vor.u32 %v3052_v48, %v2486_v46  ;;  %v2328_v54 = vld [vmem:[%s4352_s3 + $0x58] sm:$0xf0] }
  0x38   : > { %947 = vmatpush.bf16.msra.mxu1 %v2295_v4  ;;  %v2567_v52 = vor.u32 %v3072_v50, %v2566_v49  ;;  %v3031_v55 = vld [vmem:[%s4352_s3 + $0xf4] sm:$0xf]  ;;  %v2331_v56 = vor.u32 %v3011_v53, %v2328_v54  ;;  %v2408_v57 = vld [vmem:[%s4352_s3 + $0xf8] sm:$0xf0]  ;;  %v2478_v59 = vld [vmem:[%s4352_s3 + $0x180] sm:$0xf] }
  0x39   : > { %974 = vmatpush.bf16.msra.mxu3 %v2431_v23  ;;  %v2411_v58 = vor.u32 %v3031_v55, %v2408_v57  ;;  %v3050_v60 = vld [vmem:[%s4352_s3 + $0x184] sm:$0xf0]  ;;  %v2558_v61 = vld [vmem:[%s4352_s3 + $0x220] sm:$0xf]  ;;  %v3009_v0 = vld [vmem:[%s4352_s3 + $0x44] sm:$0xf] }
  0x3a   : > { %961 = vmatpush.bf16.msra.mxu2 %v2359_v11  ;;  %v2479_v62 = vor.u32 %v3050_v60, %v2478_v59  ;;  %v3070_v63 = vld [vmem:[%s4352_s3 + $0x224] sm:$0xf0]  ;;  %v2320_v1 = vld [vmem:[%s4352_s3 + $0x48] sm:$0xf0]  ;;  %v3029_v4 = vld [vmem:[%s4352_s3 + $0xe4] sm:$0xf] }
  0x3b   : > { %988 = vmatpush.bf16.msrb.mxu0 %v2495_v39  ;;  %v2559_v2 = vor.u32 %v3070_v63, %v2558_v61  ;;  %v2323_v3 = vor.u32 %v3009_v0, %v2320_v1  ;;  %v2400_v5 = vld [vmem:[%s4352_s3 + $0xe8] sm:$0xf0]  ;;  %v3047_v6 = vld [vmem:[%s4352_s3 + $0x174] sm:$0xf]  ;;  %v2472_v8 = vld [vmem:[%s4352_s3 + $0x178] sm:$0xf0] }
  0x3c   : > { %948 = vmatpush.bf16.msra.mxu1 %v2287_v12  ;;  %v2403_v7 = vor.u32 %v3029_v4, %v2400_v5  ;;  %v2475_v9 = vor.u32 %v3047_v6, %v2472_v8  ;;  %v2550_v10 = vld [vmem:[%s4352_s3 + $0x210] sm:$0xf]  ;;  %v3068_v11 = vld [vmem:[%s4352_s3 + $0x214] sm:$0xf0]  ;;  %v3007_v12 = vld [vmem:[%s4352_s3 + $0x34] sm:$0xf] }
  0x3d   : > { %975 = vmatpush.bf16.msra.mxu3 %v2423_v35  ;;  %v2312_v14 = vld [vmem:[%s4352_s3 + $0x38] sm:$0xf0]  ;;  %v3027_v15 = vld [vmem:[%s4352_s3 + $0xd4] sm:$0xf]  ;;  %v2464_v20 = vld [vmem:[%s4352_s3 + $0x168] sm:$0xf0] }
  0x3e   : > { %962 = vmatpush.bf16.msra.mxu2 %v2351_v19  ;;  %v2315_v17 = vor.u32 %v3007_v12, %v2312_v14  ;;  %v3045_v19 = vld [vmem:[%s4352_s3 + $0x164] sm:$0xf]  ;;  %v2542_v22 = vld [vmem:[%s4352_s3 + $0x200] sm:$0xf]  ;;  %v3066_v23 = vld [vmem:[%s4352_s3 + $0x204] sm:$0xf0] }
  0x3f   : > { %989 = vmatpush.bf16.msrb.mxu0 %v2487_v51  ;;  %v2467_v21 = vor.u32 %v3045_v19, %v2464_v20  ;;  %v3005_v24 = vld [vmem:[%s4352_s3 + $0x24] sm:$0xf]  ;;  %v2543_v25 = vor.u32 %v3066_v23, %v2542_v22  ;;  %v2304_v26 = vld [vmem:[%s4352_s3 + $0x28] sm:$0xf0]  ;;  %v3043_v30 = vld [vmem:[%s4352_s3 + $0x154] sm:$0xf] }
  0x40   : > { %997 = vmatpush.bf16.msrb.mxu1 %v2599_v13  ;;  %v2551_v13 = vor.u32 %v3068_v11, %v2550_v10  ;;  %v3025_v27 = vld [vmem:[%s4352_s3 + $0xc4] sm:$0xf]  ;;  %v2384_v29 = vld [vmem:[%s4352_s3 + $0xc8] sm:$0xf0]  ;;  %v2456_v32 = vld [vmem:[%s4352_s3 + $0x158] sm:$0xf0] }
  0x41   : > { %976 = vmatpush.bf16.msra.mxu3 %v2415_v47  ;;  %v2459_v33 = vor.u32 %v3043_v30, %v2456_v32  ;;  %v3003_v34 = vld [vmem:[%s4352_s3 + $0x14] sm:$0xf]  ;;  %v2296_v35 = vld [vmem:[%s4352_s3 + $0x18] sm:$0xf0]  ;;  %v3041_v39 = vld [vmem:[%s4352_s3 + $0x144] sm:$0xf] }
  0x42   : > { %1011 = vmatpush.bf16.msrb.mxu2 %v2347_v31  ;;  %v2387_v31 = vor.u32 %v3025_v27, %v2384_v29  ;;  %v2299_v36 = vor.u32 %v3003_v34, %v2296_v35  ;;  %v3023_v37 = vld [vmem:[%s4352_s3 + $0xb4] sm:$0xf]  ;;  %v2376_v38 = vld [vmem:[%s4352_s3 + $0xb8] sm:$0xf0]  ;;  %v2448_v41 = vld [vmem:[%s4352_s3 + $0x148] sm:$0xf0] }
  0x43   : > { %990 = vmatpush.bf16.msrb.mxu0 %v2479_v62  ;;  %v2451_v42 = vor.u32 %v3041_v39, %v2448_v41  ;;  %v2288_v44 = vld [vmem:[%s4352_s3 + $0x8] sm:$0xf0]  ;;  %v3021_v46 = vld [vmem:[%s4352_s3 + $0xa4] sm:$0xf]  ;;  %v3039_v49 = vld [vmem:[%s4352_s3 + $0x134] sm:$0xf] }
  0x44   : > { %998 = vmatpush.bf16.msrb.mxu1 %v2591_v16  ;;  %v2392_v16 = vld [vmem:[%s4352_s3 + $0xd8] sm:$0xf0]  ;;  %v2368_v47 = vld [vmem:[%s4352_s3 + $0xa8] sm:$0xf0]  ;;  %v3225_v51 = vld [vmem:[%s4354_s2] ss:$0 sm:$0xff] }
  0x45   : > { %1025 = vmatpush.bf16.msrb.mxu3 %v2411_v58  ;;  %v2395_v18 = vor.u32 %v3027_v15, %v2392_v16  ;;  %v2371_v48 = vor.u32 %v3021_v46, %v2368_v47  ;;  %v2440_v50 = vld [vmem:[%s4352_s3 + $0x138] sm:$0xf0]  ;;  %v3019_v53 = vld [vmem:[%s4352_s3 + $0x94] sm:$0xf]  ;;  %v3037_v55 = vld [vmem:[%s4352_s3 + $0x124] sm:$0xf] }
  0x46   : > { %1012 = vmatpush.bf16.msrb.mxu2 %v2339_v43  ;;  %v3001_v43 = vld [vmem:[%s4352_s3 + $0x4] sm:$0xf]  ;;  %v2360_v54 = vld [vmem:[%s4352_s3 + $0x98] sm:$0xf0]  ;;  %v2432_v58 = vld [vmem:[%s4352_s3 + $0x128] sm:$0xf0] }
  0x47   : > { %1039 = vmatpush.bf16.msra.mxu0 %v2475_v9  ;;  %v2291_v45 = vor.u32 %v3001_v43, %v2288_v44  ;;  %v2363_v57 = vor.u32 %v3019_v53, %v2360_v54  ;;  %v2435_v59 = vor.u32 %v3037_v55, %v2432_v58  ;;  %v3017_v61 = vld [vmem:[%s4352_s3 + $0x84] sm:$0xf]  ;;  %v2352_v62 = vld [vmem:[%s4352_s3 + $0x88] sm:$0xf0]  ;;  %v3035_v63 = vld [vmem:[%s4352_s3 + $0x114] sm:$0xf] }
  0x48   : > { %999 = vmatpush.bf16.msrb.mxu1 %v2583_v28  ;;  %v2307_v28 = vor.u32 %v3005_v24, %v2304_v26  ;;  %v2355_v0 = vor.u32 %v3017_v61, %v2352_v62  ;;  %v2424_v1 = vld [vmem:[%s4352_s3 + $0x118] sm:$0xf0]  ;;  %v3033_v5 = vld [vmem:[%s4352_s3 + $0x104] sm:$0xf]  ;;  %v2416_v6 = vld [vmem:[%s4352_s3 + $0x108] sm:$0xf0] }
  0x49   : > { %1026 = vmatpush.bf16.msrb.mxu3 %v2403_v7  ;;  %v2419_v8 = vor.u32 %v3033_v5, %v2416_v6  ;;  %v3063_v14 = vld [vmem:[%s4352_s3 + $0x1f4] sm:$0xf]  ;;  %v2536_v15 = vld [vmem:[%s4352_s3 + $0x1f8] sm:$0xf0]  ;;  %v3061_v19 = vld [vmem:[%s4352_s3 + $0x1e4] sm:$0xf] }
  0x4a   : > { %1013 = vmatpush.bf16.msrb.mxu2 %v2331_v56  ;;  %v2528_v20 = vld [vmem:[%s4352_s3 + $0x1e8] sm:$0xf0]  ;;  %v3059_v29 = vld [vmem:[%s4352_s3 + $0x1d4] sm:$0xf]  ;;  %v2520_v32 = vld [vmem:[%s4352_s3 + $0x1d8] sm:$0xf0] }
  0x4b   : > { %1040 = vmatpush.bf16.msra.mxu0 %v2467_v21  ;;  %v2531_v24 = vor.u32 %v3061_v19, %v2528_v20  ;;  %vm420_vm5 = vsmask.f32 7424  ;;  %vm439_vm6 = vsmask.f32 6400  ;;  %v2523_v44 = vor.u32 %v3059_v29, %v2520_v32  ;;  %v3057_v47 = vld [vmem:[%s4352_s3 + $0x1c4] sm:$0xf] }
  0x4c   : > { %1000 = vmatpush.bf16.msrb.mxu1 %v2575_v40  ;;  %v2379_v40 = vor.u32 %v3023_v37, %v2376_v38  ;;  %v2600_v38 = vld [vmem:[%s4352_s3 + $0x278] sm:$0xf0]  ;;  %v3055_v55 = vld [vmem:[%s4352_s3 + $0x1b4] sm:$0xf]  ;;  %vm1114_vm8 = vsmask.f32 256 }
  0x4d   : > { %1027 = vmatpush.bf16.msrb.mxu3 %v2395_v18  ;;  %v2539_v18 = vor.u32 %v3063_v14, %v2536_v15  ;;  %v3051_v6 = vld [vmem:[%s4352_s3 + $0x194] sm:$0xf]  ;;  %v3069_v14 = vld [vmem:[%s4352_s3 + $0x224] sm:$0xf]  ;;  %v2560_v15 = vld [vmem:[%s4352_s3 + $0x228] sm:$0xf0] }
  0x4e   : > { %1014 = vmatpush.bf16.msrb.mxu2 %v2323_v3  ;;  %v3067_v19 = vld [vmem:[%s4352_s3 + $0x214] sm:$0xf]  ;;  %v2552_v20 = vld [vmem:[%s4352_s3 + $0x218] sm:$0xf0]  ;;  %vm1115_vm9 = vmand %vm414_vm2, %vm1114_vm8  ;;  %s356_s20 = scalar_lea.vmem [#allocation2], %s2275_s21  ;;  %s2161_s27 = sshll.u32 %s2158_s29, 4  ;;  %s2162_s27 = int_to_ptr.hbm [resolvable:$true] %s2161_s27 }
  0x4f   : > { %1041 = vmatpush.bf16.msra.mxu0 %v2459_v33  ;;  %v3079_v33 = vld [vmem:[%s4352_s3 + $0x274] sm:$0xf]  ;;  %v3112_v29 = vld [vmem:[%s4337_s5 + $0xf8] sm:$0xff]  ;;  %s2159_s22 = sshll.u32 %s356_s20, 4  ;;  %s3241_s18 = sshra.s32 %s2162_s27, 4  ;;  %s2160_s22 = int_to_ptr.vmem [resolvable:$true] %s2159_s22  ;;  %s3242_s18 = int_to_ptr.hbm [resolvable:$true] %s3241_s18 }
  0x50   : > { %1001 = vmatpush.bf16.msrb.mxu1 %v2567_v52  ;;  %v2443_v52 = vor.u32 %v3039_v49, %v2440_v50  ;;  %v2603_v46 = vor.u32 %v3079_v33, %v2600_v38  ;;  %v3077_v50 = vld [vmem:[%s4352_s3 + $0x264] sm:$0xf]  ;;  %v3103_v32 = vld [vmem:[%s4337_s5 + $0xb0] sm:$0xff]  ;;  %v3084_v38 = vld [vmem:[%s4337_s5 + $0x18] sm:$0xff]  ;;  %s3243_s21 = scalar_lea.hbm %s3242_s18, 16  ;;  %s3247_s0 = scalar_lea.hbm %s4341_s9, 32 }
  0x51   : > { %1028 = vmatpush.bf16.msrb.mxu3 %v2387_v31  ;;  %v3111_v33 = vld [vmem:[%s4337_s5 + $0xf0] sm:$0xff]  ;;  %p3244_p11 = scmp.ne.s32.totalorder %s3242_s18, %s3243_s21  ;;  %p3248_p0 = scmp.lt.s32.totalorder %s3242_s18, %s4341_s9 }
  0x52   : > { %1015 = vmatpush.bf16.msrb.mxu2 %v2315_v17  ;;  %v3065_v17 = vld [vmem:[%s4352_s3 + $0x204] sm:$0xf]  ;;  %p3249_p1 = scmp.lt.s32.totalorder %s3247_s0, %s3243_s21 }
  0x53   : > { %1042 = vmatpush.bf16.msra.mxu0 %v2451_v42  ;;  %p3245_p12 = pnand %p3244_p11, %p3418_p5 }
  0x54   : > { %1002 = vmatpush.bf16.msrb.mxu1 %v2559_v2  ;;  %v2427_v2 = vor.u32 %v3035_v63, %v2424_v1  ;;  %v3053_v63 = vld [vmem:[%s4352_s3 + $0x1a4] sm:$0xf]  ;;  %p3250_p2 = por %p3249_p1, %p3248_p0 }
  0x55   : > { %1029 = vmatpush.bf16.msrb.mxu3 %v2379_v40  ;;  %p3246_p13 = pneg %p3245_p12 }
  0x56   : > { %1016 = vmatpush.bf16.msrb.mxu2 %v2307_v28 }
  0x57   : > { %1043 = vmatpush.bf16.msra.mxu0 %v2443_v52  ;;  %p3251_p3 = pnand %p3250_p2, %p3246_p13 }
  0x58   : > { %1003 = vmatpush.bf16.msrb.mxu1 %v2551_v13 }
  0x59   : > { %1030 = vmatpush.bf16.msrb.mxu3 %v2371_v48  ;;  %v2512_v48 = vld [vmem:[%s4352_s3 + $0x1c8] sm:$0xf0] }
  0x5a   : > { %1017 = vmatpush.bf16.msrb.mxu2 %v2299_v36  ;;  %v2515_v53 = vor.u32 %v3057_v47, %v2512_v48  ;;  %v3082_v47 = vld [vmem:[%s4337_s5 + $0x8] sm:$0xff] }
  0x5b   : > { %1044 = vmatpush.bf16.msra.mxu0 %v2435_v59  ;;  %v3075_v59 = vld [vmem:[%s4352_s3 + $0x254] sm:$0xf]  ;;  %v3090_v48 = vld [vmem:[%s4337_s5 + $0x48] sm:$0xff] }
  0x5c   : > { %1004 = vmatpush.bf16.msrb.mxu1 %v2543_v25 }
  0x5d   : > { %1031 = vmatpush.bf16.msrb.mxu3 %v2363_v57 }
  0x5e   : > { %1018 = vmatpush.bf16.msrb.mxu2 %v2291_v45 }
  0x5f   : > { %1045 = vmatpush.bf16.msra.mxu0 %v2427_v2  ;;  %v3073_v2 = vld [vmem:[%s4352_s3 + $0x244] sm:$0xf] }
  0x61   : > { %1032 = vmatpush.bf16.msrb.mxu3 %v2355_v0  ;;  %v2496_v0 = vld [vmem:[%s4352_s3 + $0x1a8] sm:$0xf0] }
  0x63   : > { %1046 = vmatpush.bf16.msra.mxu0 %v2419_v8  ;;  %v3071_v8 = vld [vmem:[%s4352_s3 + $0x234] sm:$0xf] }
  0x9f   : > { %v399_v56 = vpop.f32.mrf.mxu0 }
  0xa0   : > { %v400_v60 = vadd.f32 %v3225_v51, %v399_v56  ;;  %v2504_v56 = vld [vmem:[%s4352_s3 + $0x1b8] sm:$0xf0] }
  0xa1   : > { %v2507_v61 = vor.u32 %v3055_v55, %v2504_v56  ;;  %v3098_v56 = vld [vmem:[%s4337_s5 + $0x88] sm:$0xff] }
  0xa2   : > { %v404_v3 = vmax.f32 %v400_v60, 0.0  ;;  %v2584_v60 = vld [vmem:[%s4352_s3 + $0x258] sm:$0xf0] }
  0xa3   : > { %v2587_v62 = vor.u32 %v3075_v59, %v2584_v60  ;;  %v3119_v60 = vld [vmem:[%s4337_s5 + $0x130] sm:$0xff] }
  0xa4   : > { %v406_v9 = vpack.c.bf16 %v404_v3, %v404_v3  ;;  %v2576_v3 = vld [vmem:[%s4352_s3 + $0x248] sm:$0xf0] }
  0xa5   : > { %v2579_v5 = vor.u32 %v3073_v2, %v2576_v3  ;;  %v3118_v3 = vld [vmem:[%s4337_s5 + $0x128] sm:$0xff] }
  0xa6   : > { %v410_v12 = vunpack.c.l.b16 %v406_v9  ;;  %v2568_v9 = vld [vmem:[%s4352_s3 + $0x238] sm:$0xf0] }
  0xa7   : > { %v401_v4 = vpop.f32.mrf.mxu0 }
  0xa8   : > { %v402_v7 = vadd.f32 %v3225_v51, %v401_v4  ;;  %v2592_v51 = vld [vmem:[%s4352_s3 + $0x268] sm:$0xf0]  ;;  %v2499_v4 = vor.u32 %v3053_v63, %v2496_v0  ;;  %v3105_v63 = vld [vmem:[%s4337_s5 + $0xc0] sm:$0xff]  ;;  %v3136_v0 = vld [vmem:[%s4339_s7 + $0x38] sm:$0xff] }
  0xa9   : > { %v2595_v54 = vor.u32 %v3077_v50, %v2592_v51  ;;  %v3107_v50 = vld [vmem:[%s4337_s5 + $0xd0] sm:$0xff]  ;;  %v3081_v51 = vld [vmem:[%s4337_s5] sm:$0xff] }
  0xaa   : > { %v405_v10 = vmax.f32 %v402_v7, 0.0  ;;  %v2488_v7 = vld [vmem:[%s4352_s3 + $0x198] sm:$0xf0] }
  0xac   : > { %v407_v11 = vpack.c.bf16 %v405_v10, %v405_v10  ;;  %v2491_v10 = vor.u32 %v3051_v6, %v2488_v7  ;;  %v3135_v6 = vld [vmem:[%s4339_s7 + $0x30] sm:$0xff] }
  0xad   : > { %v3143_v7 = vld [vmem:[%s4339_s7 + $0x70] sm:$0xff] }
  0xae   : > { %v411_v13 = vunpack.c.l.b16 %v407_v11  ;;  %v2571_v11 = vor.u32 %v3071_v8, %v2568_v9  ;;  %v3117_v9 = vld [vmem:[%s4337_s5 + $0x120] sm:$0xff] }
  0xb0   : > { %v412_v16 = vpack.c.b16 %v411_v13, %v410_v12  ;;  %v3049_v12 = vld [vmem:[%s4352_s3 + $0x184] sm:$0xf]  ;;  %v2480_v13 = vld [vmem:[%s4352_s3 + $0x188] sm:$0xf0] }
  0xb2   : > { %v3840_v21 = vrot.slane %v412_v16, 7  ;;  %v2483_v16 = vor.u32 %v3049_v12, %v2480_v13  ;;  %v3134_v12 = vld [vmem:[%s4339_s7 + $0x28] sm:$0xff] }
  0xb3   : > { %v3142_v13 = vld [vmem:[%s4339_s7 + $0x68] sm:$0xff] }
  0xb4   : > { %2605 = vmatmul.msk.bf16.vlgmr.msra.gmra.mxu1 %vm3830_vm3, %v3840_v21  ;;  %v417_v22 = vsel %vm414_vm2, 0, %v3840_v21  ;;  %v419_v23 = vsel %vm414_vm2, %v3840_v21, 0 }
  0xb5   : > { %1053 = vmatpush.bf16.msra.mxu1 %v2539_v18  ;;  %v435_v25 = vrot.slane %v417_v22, 1  ;;  %v436_v26 = vrot.slane %v419_v23, 1  ;;  %v421_v27 = vshrl.u32 %v417_v22, 16  ;;  %v423_v28 = vshll.u32 %v417_v22, 16 }
  0xb6   : > { %v427_v30 = vshll.u32 %v419_v23, 16  ;;  %v443_v31 = vshrl.u32 %v419_v23, 16  ;;  %v451_v57 = vrot.slane %v417_v22, 2  ;;  %v452_v58 = vrot.slane %v419_v23, 2 }
  0xb7   : > { %v3859_v34 = vsel %vm434_vm4, %v435_v25, %v436_v26  ;;  %v425_v35 = vrot.slane %v423_v28, 1  ;;  %v440_v36 = vrot.slane %v421_v27, 1  ;;  %v441_v37 = vrot.slane %v423_v28, 2  ;;  %v3096_v25 = vld [vmem:[%s4337_s5 + $0x78] sm:$0xff]  ;;  %v3087_v26 = vld [vmem:[%s4337_s5 + $0x30] sm:$0xff] }
  0xb8   : > { %977 = vmatmul.bf16.vlgmr.msra.gmra.mxu3 %v3859_v34  ;;  %v445_v39 = vrot.slane %v443_v31, 1  ;;  %v446_v40 = vrot.slane %v427_v30, 2  ;;  %v429_v42 = vrot.slane %v427_v30, 1  ;;  %v453_v1 = vsel %vm450_vm7, %v451_v57, %v452_v58  ;;  %v3104_v28 = vld [vmem:[%s4337_s5 + $0xb8] sm:$0xff]  ;;  %v3086_v30 = vld [vmem:[%s4337_s5 + $0x28] sm:$0xff] }
  0xb9   : > { %1054 = vmatpush.bf16.msra.mxu1 %v2531_v24  ;;  %v426_v41 = vor.u32 %v425_v35, %v421_v27  ;;  %v442_v43 = vor.u32 %v441_v37, %v440_v36  ;;  %v2563_v18 = vor.u32 %v3069_v14, %v2560_v15  ;;  %v2555_v22 = vor.u32 %v3067_v19, %v2552_v20  ;;  %v3088_v24 = vld [vmem:[%s4337_s5 + $0x38] sm:$0xff]  ;;  %v3095_v27 = vld [vmem:[%s4337_s5 + $0x70] sm:$0xff]  ;;  %v3094_v31 = vld [vmem:[%s4337_s5 + $0x68] sm:$0xff] }
  0xba   : > { %v447_v45 = vor.u32 %v446_v40, %v445_v39  ;;  %1546 = vmatpush.bf16.msra.mxu3 %v3088_v24  ;;  %v3093_v35 = vld [vmem:[%s4337_s5 + $0x60] sm:$0xff]  ;;  %v3102_v36 = vld [vmem:[%s4337_s5 + $0xa8] sm:$0xff]  ;;  %v3092_v39 = vld [vmem:[%s4337_s5 + $0x58] sm:$0xff] }
  0xbb   : > { %v430_v49 = vsel %vm420_vm5, %v426_v41, %v429_v42  ;;  %v3110_v37 = vld [vmem:[%s4337_s5 + $0xe8] sm:$0xff]  ;;  %v3101_v40 = vld [vmem:[%s4337_s5 + $0xa0] sm:$0xff]  ;;  %v3083_v42 = vld [vmem:[%s4337_s5 + $0x10] sm:$0xff] }
  0xbc   : > { %963 = vmatmul.bf16.vlgmr.msra.gmra.mxu2 %v430_v49  ;;  %v448_v52 = vsel %vm439_vm6, %v442_v43, %v447_v45  ;;  %v3109_v41 = vld [vmem:[%s4337_s5 + $0xe0] sm:$0xff]  ;;  %v3091_v43 = vld [vmem:[%s4337_s5 + $0x50] sm:$0xff]  ;;  %v3100_v45 = vld [vmem:[%s4337_s5 + $0x98] sm:$0xff] }
  0xbd   : > { %991 = vmatmul.bf16.vlgmr.msrb.gmra.mxu0 %v448_v52  ;;  %1055 = vmatpush.bf16.msra.mxu1 %v2523_v44  ;;  %v3106_v57 = vld [vmem:[%s4337_s5 + $0xc8] sm:$0xff]  ;;  %v3116_v14 = vld [vmem:[%s4337_s5 + $0x118] sm:$0xff]  ;;  %v3133_v19 = vld [vmem:[%s4339_s7 + $0x20] sm:$0xff] }
  0xbe   : > { %1067 = vmatpush.bf16.msra.mxu2 %v2603_v46  ;;  %1560 = vmatpush.bf16.msrb.mxu0 %v3096_v25  ;;  %v3108_v46 = vld [vmem:[%s4337_s5 + $0xd8] sm:$0xff]  ;;  %v3141_v20 = vld [vmem:[%s4339_s7 + $0x60] sm:$0xff] }
  0xbf   : > { %1547 = vmatpush.bf16.msra.mxu3 %v3087_v26  ;;  %v3124_v15 = vld [vmem:[%s4337_s5 + $0x158] sm:$0xff] }
  0xc0   : > { %v3132_v26 = vld [vmem:[%s4339_s7 + $0x18] sm:$0xff] }
  0xc1   : > { %1056 = vmatpush.bf16.msra.mxu1 %v2515_v53  ;;  %v3120_v53 = vld [vmem:[%s4337_s5 + $0x138] sm:$0xff] }
  0xc2   : > { %1068 = vmatpush.bf16.msra.mxu2 %v2595_v54  ;;  %1561 = vmatpush.bf16.msrb.mxu0 %v3095_v27  ;;  %v3128_v54 = vld [vmem:[%s4337_s5 + $0x178] sm:$0xff] }
  0xc3   : > { %1548 = vmatpush.bf16.msra.mxu3 %v3086_v30  ;;  %v3140_v27 = vld [vmem:[%s4339_s7 + $0x58] sm:$0xff]  ;;  %v3122_v30 = vld [vmem:[%s4337_s5 + $0x148] sm:$0xff] }
  0xc4   : > { %1005 = vmatmul.bf16.vlgmr.msrb.gmra.mxu1 %v453_v1 }
  0xc5   : > { %1057 = vmatpush.bf16.msra.mxu1 %v2507_v61  ;;  %v3127_v61 = vld [vmem:[%s4337_s5 + $0x170] sm:$0xff] }
  0xc6   : > { %1069 = vmatpush.bf16.msra.mxu2 %v2587_v62  ;;  %1562 = vmatpush.bf16.msrb.mxu0 %v3094_v31  ;;  %v3097_v62 = vld [vmem:[%s4337_s5 + $0x80] sm:$0xff] }
  0xc8   : > { %1033 = vmatmul.bf16.vlgmr.msrb.gmra.mxu3 %v430_v49  ;;  %v3099_v49 = vld [vmem:[%s4337_s5 + $0x90] sm:$0xff] }
  0xc9   : > { %1058 = vmatpush.bf16.msra.mxu1 %v2499_v4  ;;  %v3126_v4 = vld [vmem:[%s4337_s5 + $0x168] sm:$0xff] }
  0xca   : > { %1070 = vmatpush.bf16.msra.mxu2 %v2579_v5  ;;  %1563 = vmatpush.bf16.msrb.mxu0 %v3093_v35 }
  0xcc   : > { %2607 = vmatmul.msk.bf16.vlgmr.msrb.gmra.mxu2 %vm3830_vm3, %v3840_v21  ;;  %v2544_v21 = vld [vmem:[%s4352_s3 + $0x208] sm:$0xf0] }
  0xcd   : > { %1047 = vmatmul.bf16.vlgmr.msra.gmra.mxu0 %v3859_v34  ;;  %1059 = vmatpush.bf16.msra.mxu1 %v2491_v10  ;;  %v2547_v23 = vor.u32 %v3065_v17, %v2544_v21  ;;  %v3085_v34 = vld [vmem:[%s4337_s5 + $0x20] sm:$0xff]  ;;  %v3115_v17 = vld [vmem:[%s4337_s5 + $0x110] sm:$0xff] }
  0xce   : > { %1071 = vmatpush.bf16.msra.mxu2 %v2571_v11  ;;  %1549 = vmatpush.bf16.msra.mxu3 %v3085_v34  ;;  %v3125_v10 = vld [vmem:[%s4337_s5 + $0x160] sm:$0xff]  ;;  %v3123_v21 = vld [vmem:[%s4337_s5 + $0x150] sm:$0xff] }
  0xcf   : > { %1564 = vmatpush.bf16.msrb.mxu0 %v3092_v39 }
  0xd1   : > { %1060 = vmatpush.bf16.msra.mxu1 %v2483_v16 }
  0xd2   : > { %1072 = vmatpush.bf16.msra.mxu2 %v2563_v18  ;;  %1550 = vmatpush.bf16.msra.mxu3 %v3084_v38  ;;  %v3121_v38 = vld [vmem:[%s4337_s5 + $0x140] sm:$0xff] }
  0xd3   : > { %1565 = vmatpush.bf16.msrb.mxu0 %v3091_v43 }
  0xd4   : > { %1061 = vmatmul.bf16.vlgmr.msra.gmra.mxu1 %v448_v52  ;;  %v3089_v52 = vld [vmem:[%s4337_s5 + $0x40] sm:$0xff] }
  0xd5   : > { %1574 = vmatpush.bf16.msrb.mxu1 %v3104_v28 }
  0xd6   : > { %1073 = vmatpush.bf16.msra.mxu2 %v2555_v22  ;;  %1551 = vmatpush.bf16.msra.mxu3 %v3083_v42  ;;  %v535_v22 = vld [vmem:[%s4357_s4] sm:$0x3] }
  0xd7   : > { %1566 = vmatpush.bf16.msrb.mxu0 %v3090_v48  ;;  %v537_v25 = vperm.slane %v535_v22, 0 }
  0xd9   : > { %1575 = vmatpush.bf16.msrb.mxu1 %v3103_v32  ;;  %v3131_v32 = vld [vmem:[%s4339_s7 + $0x10] sm:$0xff] }
  0xda   : > { %1074 = vmatpush.bf16.msra.mxu2 %v2547_v23  ;;  %1552 = vmatpush.bf16.msra.mxu3 %v3082_v47  ;;  %v538_v23 = vperm.slane %v535_v22, 1 }
  0xdb   : > { %1567 = vmatpush.bf16.msrb.mxu0 %v3089_v52 }
  0xdd   : > { %1075 = vmatmul.bf16.vlgmr.msra.gmra.mxu2 %v453_v1  ;;  %1576 = vmatpush.bf16.msrb.mxu1 %v3102_v36  ;;  %v3144_v1 = vld [vmem:[%s4339_s7 + $0x78] sm:$0xff] }
  0xde   : > { %1588 = vmatpush.bf16.msrb.mxu2 %v3112_v29  ;;  %1553 = vmatpush.bf16.msra.mxu3 %v3081_v51  ;;  %v3114_v29 = vld [vmem:[%s4337_s5 + $0x108] sm:$0xff] }
  0xdf   : > { %1616 = vmatpush.bf16.msra.mxu0 %v3128_v54  ;;  %v3137_v54 = vld [vmem:[%s4339_s7 + $0x40] sm:$0xff] }
  0xe1   : > { %1577 = vmatpush.bf16.msrb.mxu1 %v3101_v40 }
  0xe2   : > { %1589 = vmatpush.bf16.msrb.mxu2 %v3111_v33  ;;  %1602 = vmatpush.bf16.msrb.mxu3 %v3120_v53  ;;  %v3139_v33 = vld [vmem:[%s4339_s7 + $0x50] sm:$0xff]  ;;  %v3129_v53 = vld [vmem:[%s4339_s7] sm:$0xff] }
  0xe3   : > { %1617 = vmatpush.bf16.msra.mxu0 %v3127_v61 }
  0xe5   : > { %1578 = vmatpush.bf16.msrb.mxu1 %v3100_v45  ;;  %v3138_v45 = vld [vmem:[%s4339_s7 + $0x48] sm:$0xff] }
  0xe6   : > { %1590 = vmatpush.bf16.msrb.mxu2 %v3110_v37  ;;  %1603 = vmatpush.bf16.msrb.mxu3 %v3119_v60  ;;  %v3113_v37 = vld [vmem:[%s4337_s5 + $0x100] sm:$0xff] }
  0xe7   : > { %1618 = vmatpush.bf16.msra.mxu0 %v3126_v4 }
  0xe9   : > { %1579 = vmatpush.bf16.msrb.mxu1 %v3099_v49 }
  0xea   : > { %1591 = vmatpush.bf16.msrb.mxu2 %v3109_v41  ;;  %1604 = vmatpush.bf16.msrb.mxu3 %v3118_v3 }
  0xeb   : > { %1619 = vmatpush.bf16.msra.mxu0 %v3125_v10 }
  0xed   : > { %1580 = vmatpush.bf16.msrb.mxu1 %v3098_v56 }
  0xee   : > { %1592 = vmatpush.bf16.msrb.mxu2 %v3108_v46  ;;  %1605 = vmatpush.bf16.msrb.mxu3 %v3117_v9 }
  0xef   : > { %1620 = vmatpush.bf16.msra.mxu0 %v3124_v15 }
  0xf1   : > { %1581 = vmatpush.bf16.msrb.mxu1 %v3097_v62 }
  0xf2   : > { %1593 = vmatpush.bf16.msrb.mxu2 %v3107_v50  ;;  %1606 = vmatpush.bf16.msrb.mxu3 %v3116_v14 }
  0xf3   : > { %1621 = vmatpush.bf16.msra.mxu0 %v3123_v21 }
  0xf5   : > { %2048 = vmatpush.bf16.msra.mxu1 %v3136_v0 }
  0xf6   : > { %1594 = vmatpush.bf16.msrb.mxu2 %v3106_v57  ;;  %1607 = vmatpush.bf16.msrb.mxu3 %v3115_v17 }
  0xf7   : > { %1622 = vmatpush.bf16.msra.mxu0 %v3122_v30 }
  0xf9   : > { %2049 = vmatpush.bf16.msra.mxu1 %v3135_v6 }
  0xfa   : > { %1595 = vmatpush.bf16.msrb.mxu2 %v3105_v63  ;;  %1608 = vmatpush.bf16.msrb.mxu3 %v3114_v29 }
  0xfb   : > { %1623 = vmatpush.bf16.msra.mxu0 %v3121_v38 }
  0xfd   : > { %2050 = vmatpush.bf16.msra.mxu1 %v3134_v12 }
  0xfe   : > { %2062 = vmatpush.bf16.msra.mxu2 %v3144_v1  ;;  %1609 = vmatpush.bf16.msrb.mxu3 %v3113_v37 }
 0x101   : > { %2051 = vmatpush.bf16.msra.mxu1 %v3133_v19 }
 0x102   : > { %2063 = vmatpush.bf16.msra.mxu2 %v3143_v7 }
 0x105   : > { %2052 = vmatpush.bf16.msra.mxu1 %v3132_v26 }
 0x106   : > { %2064 = vmatpush.bf16.msra.mxu2 %v3142_v13 }
 0x109   : > { %2053 = vmatpush.bf16.msra.mxu1 %v3131_v32  ;;  %v3159_v32 = vld [vmem:[%s4339_s7 + $0xf0] sm:$0xff] }
 0x10a   : > { %2065 = vmatpush.bf16.msra.mxu2 %v3141_v20 }
 0x10e   : > { %2066 = vmatpush.bf16.msra.mxu2 %v3140_v27 }
 0x112   : > { %2067 = vmatpush.bf16.msra.mxu2 %v3139_v33 }
 0x116   : > { %2068 = vmatpush.bf16.msra.mxu2 %v3138_v45  ;;  %v3150_v45 = vld [vmem:[%s4339_s7 + $0xa8] sm:$0xff] }
 0x11a   : > { %2069 = vmatpush.bf16.msra.mxu2 %v3137_v54 }
 0x131   : > { %v4003_v44 = vpop.f32.mrf.mxu1 }
 0x132   : > { %v951_v34 = vadd.f32 %v4003_v44, %v537_v25  ;;  %v3130_v44 = vld [vmem:[%s4339_s7 + $0x8] sm:$0xff] }
 0x133   : > { %2054 = vmatpush.bf16.msra.mxu1 %v3130_v44  ;;  %v3176_v44 = vld [vmem:[%s4339_s7 + $0x178] sm:$0xff] }
 0x137   : > { %2055 = vmatpush.bf16.msra.mxu1 %v3129_v53 }
 0x139   : > { %v4035_v55 = vpop.f32.mrf.mxu1 }
 0x13a   : > { %v4065_v2 = vpop.f32.mrf.mxu0  ;;  %v953_v39 = vadd.f32 %v4035_v55, %v537_v25 }
 0x13b   : > { %v4045_v59 = vpop.f32.mrf.mxu3 }
 0x13f   : > { %v4043_v58 = vpop.f32.mrf.mxu2 }
 0x140   : > { %v965_v40 = vadd.f32 %v4043_v58, %v951_v34 }
 0x141   : > { %v4079_v8 = vpop.f32.mrf.mxu1 }
 0x142   : > { %v994_v16 = vpop.f32.mrf.mxu0  ;;  %v979_v47 = vadd.f32 %v4045_v59, %v965_v40 }
 0x143   : > { %v980_v11 = vpop.f32.mrf.mxu3 }
 0x144   : > { %v993_v55 = vadd.f32 %v4065_v2, %v979_v47  ;;  %v3158_v47 = vld [vmem:[%s4339_s7 + $0xe8] sm:$0xff] }
 0x146   : > { %v1007_v61 = vadd.f32 %v4079_v8, %v993_v55 }
 0x147   : > { %v966_v5 = vpop.f32.mrf.mxu2 }
 0x148   : > { %v967_v42 = vadd.f32 %v966_v5, %v953_v39  ;;  %v1081_v4 = vmax.f32 %v1007_v61, 0.0 }
 0x149   : > { %v1008_v24 = vpop.f32.mrf.mxu1 }
 0x14a   : > { %v1048_v36 = vpop.f32.mrf.mxu0  ;;  %v981_v50 = vadd.f32 %v980_v11, %v967_v42 }
 0x14b   : > { %v1034_v28 = vpop.f32.mrf.mxu3 }
 0x14c   : > { %v995_v58 = vadd.f32 %v994_v16, %v981_v50  ;;  %v3175_v50 = vld [vmem:[%s4339_s7 + $0x170] sm:$0xff] }
 0x14e   : > { %v1009_v63 = vadd.f32 %v1008_v24, %v995_v58  ;;  %v3160_v24 = vld [vmem:[%s4339_s7 + $0xf8] sm:$0xff]  ;;  %v3174_v58 = vld [vmem:[%s4339_s7 + $0x168] sm:$0xff] }
 0x14f   : > { %v1020_v18 = vpop.f32.mrf.mxu2 }
 0x150   : > { %v1021_v31 = vadd.f32 %v1020_v18, %v538_v23  ;;  %v1083_v6 = vmax.f32 %v1009_v63, 0.0  ;;  %v3165_v63 = vld [vmem:[%s4339_s7 + $0x120] sm:$0xff] }
 0x151   : > { %v1062_v46 = vpop.f32.mrf.mxu1 }
 0x152   : > { %v1035_v41 = vadd.f32 %v1034_v28, %v1021_v31  ;;  %v1050_v57 = vpop.f32.mrf.mxu0  ;;  %v3151_v31 = vld [vmem:[%s4339_s7 + $0xb0] sm:$0xff] }
 0x153   : > { %v1036_v49 = vpop.f32.mrf.mxu3 }
 0x154   : > { %v1049_v48 = vadd.f32 %v1048_v36, %v1035_v41  ;;  %v3168_v41 = vld [vmem:[%s4339_s7 + $0x138] sm:$0xff] }
 0x156   : > { %v1063_v56 = vadd.f32 %v1062_v46, %v1049_v48 }
 0x157   : > { %v1022_v35 = vpop.f32.mrf.mxu2 }
 0x158   : > { %v1023_v43 = vadd.f32 %v1022_v35, %v538_v23  ;;  %v3152_v23 = vld [vmem:[%s4339_s7 + $0xb8] sm:$0xff] }
 0x159   : > { %v1064_v62 = vpop.f32.mrf.mxu1 }
 0x15a   : > { %v1037_v51 = vadd.f32 %v1036_v49, %v1023_v43  ;;  %v3167_v49 = vld [vmem:[%s4339_s7 + $0x130] sm:$0xff] }
 0x15c   : > { %v1051_v59 = vadd.f32 %v1050_v57, %v1037_v51  ;;  %v3149_v51 = vld [vmem:[%s4339_s7 + $0xa0] sm:$0xff]  ;;  %v3166_v57 = vld [vmem:[%s4339_s7 + $0x128] sm:$0xff] }
 0x15e   : > { %v1065_v0 = vadd.f32 %v1064_v62, %v1051_v59  ;;  %v3148_v59 = vld [vmem:[%s4339_s7 + $0x98] sm:$0xff] }
 0x160   : > { %v1076_v52 = vpop.f32.mrf.mxu2 }
 0x161   : > { %v1077_v60 = vadd.f32 %v1076_v52, %v1063_v56  ;;  %v3157_v52 = vld [vmem:[%s4339_s7 + $0xe0] sm:$0xff] }
 0x163   : > { %v1082_v1 = vmax.f32 %v1077_v60, 0.0  ;;  %v3156_v60 = vld [vmem:[%s4339_s7 + $0xd8] sm:$0xff] }
 0x165   : > { %v1085_v7 = vpack.c.bf16 %v1082_v1, %v1081_v4  ;;  %v3147_v1 = vld [vmem:[%s4339_s7 + $0x90] sm:$0xff]  ;;  %v3164_v4 = vld [vmem:[%s4339_s7 + $0x118] sm:$0xff] }
 0x167   : > { %v1089_v10 = vunpack.c.l.b16 %v1085_v7  ;;  %v1090_v11 = vunpack.c.h.b16 %v1085_v7  ;;  %v3154_v7 = vld [vmem:[%s4339_s7 + $0xc8] sm:$0xff] }
 0x168   : > { %v1078_v3 = vpop.f32.mrf.mxu2 }
 0x169   : > { %v1079_v5 = vadd.f32 %v1078_v3, %v1065_v0  ;;  %v3173_v0 = vld [vmem:[%s4339_s7 + $0x160] sm:$0xff]  ;;  %v3155_v3 = vld [vmem:[%s4339_s7 + $0xd0] sm:$0xff] }
 0x16b   : > { %v1084_v9 = vmax.f32 %v1079_v5, 0.0  ;;  %v3172_v5 = vld [vmem:[%s4339_s7 + $0x158] sm:$0xff] }
 0x16d   : > { %v1086_v2 = vpack.c.bf16 %v1084_v9, %v1083_v6  ;;  %v3146_v6 = vld [vmem:[%s4339_s7 + $0x88] sm:$0xff]  ;;  %v3163_v9 = vld [vmem:[%s4339_s7 + $0x110] sm:$0xff] }
 0x16f   : > { %v1091_v12 = vunpack.c.l.b16 %v1086_v2  ;;  %v1092_v13 = vunpack.c.h.b16 %v1086_v2  ;;  %v3171_v2 = vld [vmem:[%s4339_s7 + $0x150] sm:$0xff] }
 0x171   : > { %v1093_v14 = vpack.c.b16 %v1091_v12, %v1089_v10  ;;  %v1094_v15 = vpack.c.b16 %v1092_v13, %v1090_v11  ;;  %v3145_v10 = vld [vmem:[%s4339_s7 + $0x80] sm:$0xff]  ;;  %v3162_v12 = vld [vmem:[%s4339_s7 + $0x108] sm:$0xff] }
 0x172   : > { %v3153_v11 = vld [vmem:[%s4339_s7 + $0xc0] sm:$0xff]  ;;  %v3170_v13 = vld [vmem:[%s4339_s7 + $0x148] sm:$0xff] }
 0x173   : > { %v1096_v16 = vshrl.u32 %v1093_v14, 16  ;;  %v1103_v8 = vshrl.u32 %v1094_v15, 16  ;;  %v1099_v19 = vshll.u32 %v1093_v14, 16  ;;  %v1106_v22 = vshll.u32 %v1094_v15, 16  ;;  %v3161_v14 = vld [vmem:[%s4339_s7 + $0x100] sm:$0xff] }
 0x174   : > { %v3169_v15 = vld [vmem:[%s4339_s7 + $0x140] sm:$0xff] }
 0x175   : > { %v1098_v18 = vrot.slane %v1096_v16, 7  ;;  %v1105_v20 = vrot.slane %v1103_v8, 7  ;;  %v3226_v8 = vld [vmem:[%s4338_s6] ss:$0 sm:$0xff] }
 0x177   : > { %v1101_v17 = vor.u32 %v1099_v19, %v1098_v18  ;;  %v1108_v21 = vor.u32 %v1106_v22, %v1105_v20  ;;  %v1118_v25 = vsel %vm1115_vm9, %v1098_v18, 0  ;;  %v1119_v26 = vsel %vm1115_vm9, %v1105_v20, 0 }
 0x178   : > { %v1128_v30 = vshll.u32 %v1118_v25, 16  ;;  %v1140_v34 = vshll.u32 %v1119_v26, 16  ;;  %v1151_v55 = vrot.slane %v1118_v25, 1  ;;  %v1154_v56 = vrot.slane %v1119_v26, 1 }
 0x179   : > { %v4163_v27 = vsel %vm1115_vm9, 0, %v1101_v17  ;;  %v4165_v28 = vsel %vm1115_vm9, 0, %v1108_v21 }
 0x17a   : > { %1554 = vmatmul.bf16.vlgmr.msra.gmra.mxu3 %v4163_v27  ;;  %1568 = vmatmul.bf16.vlgmr.msrb.gmra.mxu0 %v4165_v28  ;;  %v1123_v29 = vshll.u32 %v4163_v27, 16  ;;  %v1135_v33 = vshll.u32 %v4165_v28, 16  ;;  %v1121_v35 = vshrl.u32 %v4163_v27, 16  ;;  %v1133_v37 = vshrl.u32 %v4165_v28, 16 }
 0x17b   : > { %2076 = vmatpush.bf16.msra.mxu3 %v3152_v23  ;;  %2090 = vmatpush.bf16.msrb.mxu0 %v3160_v24  ;;  %v1130_v40 = vrot.slane %v1128_v30, 1  ;;  %v1142_v43 = vrot.slane %v1140_v34, 1  ;;  %v1150_v53 = vrot.slane %v4163_v27, 1  ;;  %v1153_v54 = vrot.slane %v4165_v28, 1 }
 0x17c   : > { %v1125_v36 = vrot.slane %v1123_v29, 1  ;;  %v1137_v38 = vrot.slane %v1135_v33, 1 }
 0x17d   : > { %v1152_v61 = vsel %vm434_vm4, %v1150_v53, %v1151_v55  ;;  %v1155_v62 = vsel %vm434_vm4, %v1153_v54, %v1154_v56  ;;  %v2132_v53 = vld [vmem:[%s4340_s8] sm:$0xff] }
 0x17e   : > { %v1126_v39 = vor.u32 %v1125_v36, %v1121_v35  ;;  %v1138_v42 = vor.u32 %v1137_v38, %v1133_v37 }
 0x17f   : > { %2077 = vmatpush.bf16.msra.mxu3 %v3151_v31  ;;  %2091 = vmatpush.bf16.msrb.mxu0 %v3159_v32 }
 0x180   : > { %v1131_v46 = vsel %vm420_vm5, %v1126_v39, %v1130_v40  ;;  %v1143_v48 = vsel %vm420_vm5, %v1138_v42, %v1142_v43 }
 0x181   : > { %1582 = vmatmul.bf16.vlgmr.msrb.gmra.mxu1 %v1131_v46  ;;  %1596 = vmatmul.bf16.vlgmr.msrb.gmra.mxu2 %v1143_v48 }
 0x182   : > { %2104 = vmatpush.bf16.msrb.mxu1 %v3168_v41  ;;  %2118 = vmatpush.bf16.msrb.mxu2 %v3176_v44 }
 0x183   : > { %2078 = vmatpush.bf16.msra.mxu3 %v3150_v45  ;;  %2092 = vmatpush.bf16.msrb.mxu0 %v3158_v47 }
 0x186   : > { %2105 = vmatpush.bf16.msrb.mxu1 %v3167_v49  ;;  %2119 = vmatpush.bf16.msrb.mxu2 %v3175_v50 }
 0x187   : > { %2079 = vmatpush.bf16.msra.mxu3 %v3149_v51  ;;  %2093 = vmatpush.bf16.msrb.mxu0 %v3157_v52 }
 0x18a   : > { %1610 = vmatmul.bf16.vlgmr.msrb.gmra.mxu3 %v1152_v61  ;;  %1624 = vmatmul.bf16.vlgmr.msra.gmra.mxu0 %v1155_v62 }
 0x18b   : > { %2106 = vmatpush.bf16.msrb.mxu1 %v3166_v57  ;;  %2120 = vmatpush.bf16.msrb.mxu2 %v3174_v58 }
 0x18c   : > { %2080 = vmatpush.bf16.msra.mxu3 %v3148_v59  ;;  %2094 = vmatpush.bf16.msrb.mxu0 %v3156_v60 }
 0x18f   : > { %2107 = vmatpush.bf16.msrb.mxu1 %v3165_v63  ;;  %2121 = vmatpush.bf16.msrb.mxu2 %v3173_v0  ;;  %v2133_v0 = vld [vmem:[%s4340_s8 + $0x8] sm:$0xff] }
 0x190   : > { %2081 = vmatpush.bf16.msra.mxu3 %v3147_v1  ;;  %2095 = vmatpush.bf16.msrb.mxu0 %v3155_v3 }
 0x191   : > { %2056 = vmatmul.bf16.vlgmr.msra.gmra.mxu1 %v4163_v27  ;;  %2070 = vmatmul.bf16.vlgmr.msra.gmra.mxu2 %v4165_v28 }
 0x193   : > { %2108 = vmatpush.bf16.msrb.mxu1 %v3164_v4  ;;  %2122 = vmatpush.bf16.msrb.mxu2 %v3172_v5 }
 0x194   : > { %2082 = vmatpush.bf16.msra.mxu3 %v3146_v6  ;;  %2096 = vmatpush.bf16.msrb.mxu0 %v3154_v7 }
 0x197   : > { %2109 = vmatpush.bf16.msrb.mxu1 %v3163_v9  ;;  %2123 = vmatpush.bf16.msrb.mxu2 %v3171_v2 }
 0x198   : > { %2083 = vmatpush.bf16.msra.mxu3 %v3145_v10  ;;  %2097 = vmatpush.bf16.msrb.mxu0 %v3153_v11 }
 0x19b   : > { %2084 = vmatmul.bf16.vlgmr.msra.gmra.mxu3 %v1131_v46  ;;  %2098 = vmatmul.bf16.vlgmr.msrb.gmra.mxu0 %v1143_v48 }
 0x19c   : > { %2110 = vmatpush.bf16.msrb.mxu1 %v3162_v12  ;;  %2124 = vmatpush.bf16.msrb.mxu2 %v3170_v13 }
 0x1a0   : > { %2111 = vmatpush.bf16.msrb.mxu1 %v3161_v14  ;;  %2125 = vmatpush.bf16.msrb.mxu2 %v3169_v15 }
 0x1a3   : > { %2112 = vmatmul.bf16.vlgmr.msrb.gmra.mxu1 %v1152_v61  ;;  %2126 = vmatmul.bf16.vlgmr.msrb.gmra.mxu2 %v1155_v62 }
 0x1f7   : > { %v1569_v16 = vpop.f32.mrf.mxu0 }
 0x1fd   : > { %v1555_v18 = vpop.f32.mrf.mxu3 }
 0x1fe   : > { %v1583_v19 = vpop.f32.mrf.mxu1  ;;  %v1556_v20 = vadd.f32 %v3226_v8, %v1555_v18 }
 0x1ff   : > { %v1571_v22 = vpop.f32.mrf.mxu0 }
 0x200   : > { %v1570_v17 = vadd.f32 %v1569_v16, %v1556_v20 }
 0x202   : > { %v1584_v25 = vadd.f32 %v1583_v19, %v1570_v17 }
 0x204   : > { %v1597_v21 = vpop.f32.mrf.mxu2 }
 0x205   : > { %v1557_v23 = vpop.f32.mrf.mxu3  ;;  %v1598_v28 = vadd.f32 %v1597_v21, %v1584_v25 }
 0x206   : > { %v1585_v24 = vpop.f32.mrf.mxu1  ;;  %v1558_v26 = vadd.f32 %v3226_v8, %v1557_v23 }
 0x207   : > { %v1625_v27 = vpop.f32.mrf.mxu0 }
 0x208   : > { %v1572_v29 = vadd.f32 %v1571_v22, %v1558_v26 }
 0x20a   : > { %v1586_v34 = vadd.f32 %v1585_v24, %v1572_v29 }
 0x20c   : > { %v1599_v30 = vpop.f32.mrf.mxu2 }
 0x20d   : > { %v1611_v31 = vpop.f32.mrf.mxu3  ;;  %v1600_v36 = vadd.f32 %v1599_v30, %v1586_v34 }
 0x20e   : > { %v1612_v32 = vadd.f32 %v1611_v31, %v1598_v28  ;;  %v2057_v33 = vpop.f32.mrf.mxu1 }
 0x20f   : > { %v1627_v37 = vpop.f32.mrf.mxu0 }
 0x210   : > { %v1626_v35 = vadd.f32 %v1625_v27, %v1612_v32 }
 0x212   : > { %1630 = vxpose.xlu0.b32.start [1/2] (short) (narrow) %v1626_v35, 8 }
 0x214   : > { %v2071_v38 = vpop.f32.mrf.mxu2 }
 0x215   : > { %v1613_v39 = vpop.f32.mrf.mxu3  ;;  %v2072_v43 = vadd.f32 %v2071_v38, %v2057_v33 }
 0x216   : > { %v1614_v40 = vadd.f32 %v1613_v39, %v1600_v36  ;;  %v2059_v41 = vpop.f32.mrf.mxu1 }
 0x218   : > { %v1628_v42 = vadd.f32 %v1627_v37, %v1614_v40  ;;  %v2099_v45 = vpop.f32.mrf.mxu0 }
 0x21a   : > { %1631 = vxpose.xlu0.b32.end [2/2] (short) (narrow) %v1628_v42, 8 }
 0x21c   : > { %v2073_v44 = vpop.f32.mrf.mxu2 }
 0x21d   : > { %v2074_v51 = vadd.f32 %v2073_v44, %v2059_v41 }
 0x21e   : > { %v2085_v46 = vpop.f32.mrf.mxu3 }
 0x21f   : > { %v2086_v47 = vadd.f32 %v2085_v46, %v2072_v43 }
 0x220   : > { %v2113_v48 = vpop.f32.mrf.mxu1  ;;  %v2101_v57 = vpop.f32.mrf.mxu0 }
 0x221   : > { %v2100_v49 = vadd.f32 %v2099_v45, %v2086_v47 }
 0x223   : > { %v2114_v50 = vadd.f32 %v2113_v48, %v2100_v49 }
 0x226   : > { %v2127_v52 = vpop.f32.mrf.mxu2  ;;  %v2087_v54 = vpop.f32.mrf.mxu3 }
 0x227   : > { %v2128_v55 = vadd.f32 %v2127_v52, %v2114_v50  ;;  %v2088_v56 = vadd.f32 %v2087_v54, %v2074_v51 }
 0x228   : > { %v2115_v60 = vpop.f32.mrf.mxu1 }
 0x229   : > { %v2134_v58 = vadd.f32 %v2132_v53, %v2128_v55  ;;  %v2102_v59 = vadd.f32 %v2101_v57, %v2088_v56 }
 0x22b   : > { %v2136_v61 = vmax.f32 %v2134_v58, 0.0  ;;  %v2116_v62 = vadd.f32 %v2115_v60, %v2102_v59 }
 0x22d   : > { %2139 = vst.msk [vmem:[%s356_s20] sm:$0xff] %vm2138_vm10, %v2136_v61 }
 0x22e   : > { %v2129_v63 = vpop.f32.mrf.mxu2 }
 0x22f   : > { %v2130_v1 = vadd.f32 %v2129_v63, %v2116_v62 }
 0x231   : > { %v2135_v3 = vadd.f32 %v2133_v0, %v2130_v1 }
 0x233   : > { %v2137_v4 = vmax.f32 %v2135_v3, 0.0 }
 0x235   : > { %2140 = vst.msk [vmem:[%s356_s20 + $0x8] sm:$0xff] %vm2138_vm10, %v2137_v4 }
 0x236   : > { %3254 = shalt.err (!%p3251_p3)
}
 0x237   : > { %s3323_s20 = smov 128   ;;  %s3324_s26 = smov 8   ;;  %vm1662_vm11 = vcmask 130048  }
 0x238   : > { %3178 = dma.vmem_to_hbm [thread:$0]  (%p3418_p5), %s2160_s22, 256, %s2162_s27, %s2142_s12, %s3323_s20, %s3323_s20, %s3324_s26  }
 0x239   : > { %s2276_s28 = sshll.u32 %s4275_s30, 3  ;;  %s2996_s1 = sshll.u32 %s3401_s17, 3 }
 0x23a   : > { %s2174_s2 = scalar_lea.hbm %s4342_s10, %s2996_s1  ;;  %s363_s3 = scalar_lea.vmem [#allocation4], %s2276_s28 }
 0x23b   : > { %s2176_s0 = sshll.u32 %s363_s3, 4  ;;  %s2178_s18 = sshll.u32 %s2174_s2, 4  ;;  %s2177_s0 = int_to_ptr.vmem [resolvable:$true] %s2176_s0  ;;  %s2179_s18 = int_to_ptr.hbm [resolvable:$true] %s2178_s18 }
 0x23c   : > { %s2147_s21 = scalar_lea.sflag [#allocation5], %s4275_s30  ;;  %s3269_s25 = sshra.s32 %s2179_s18, 4  ;;  %s3270_s25 = int_to_ptr.hbm [resolvable:$true] %s3269_s25 }
 0x23d   : > { %s3271_s4 = scalar_lea.hbm %s3270_s25, 8  ;;  %s3275_s27 = scalar_lea.hbm %s4342_s10, 16 }
 0x23e   : > { %p3272_p4 = scmp.ne.s32.totalorder %s3270_s25, %s3271_s4  ;;  %p3276_p9 = scmp.lt.s32.totalorder %s3270_s25, %s4342_s10 }
 0x23f   : > { %p3277_p10 = scmp.lt.s32.totalorder %s3275_s27, %s3271_s4 }
 0x240   : > { %p3273_p7 = pnand %p3272_p4, %p3418_p5 }
 0x241   : > { %p3278_p11 = por %p3277_p10, %p3276_p9 }
 0x242   : > { %p3274_p8 = pneg %p3273_p7 }
 0x244   : > { %p3279_p12 = pnand %p3278_p11, %p3274_p8 }
 0x2b6   : > { %v1646_v5 = vpop.trf.xlu0 }
 0x2b7   : > { %1663 = vst.msk [vmem:[%s363_s3] sm:$0xff] %vm1662_vm11, %v1646_v5 }
 0x2b8   : > { %3282 = shalt.err (!%p3279_p12)
}
 0x2b9   : > { %3179 = dma.vmem_to_hbm [thread:$0]  (%p3418_p5), %s2177_s0, 128, %s2179_s18, %s2147_s21  }
 0x2ba PF: > { %p3189_p13 = scmp.ge.s32.totalorder %s3321_s16, 2  ;;  %s2190_s30 = sand.u32 1, %s3309_s13  }
 0x2bb   : > { %s2191_s26 = scalar_lea.sflag [#allocation3], %s2190_s30 }
 0x2bc   : > { %p3183_p0 = pnand %p3189_p13, %p3422_p6 }
 0x2be   : > { %p3184_p1 = pneg %p3183_p0 }
 0x2c0   : > { %3300 = dma.done.wait (%p3184_p1), %s2191_s26, 256  }
 0x2c1   : > { %3302 = vsyncadd (%p3184_p1), %s2191_s26, 4294967040  ;;  %s2201_s28 = scalar_lea.sflag [#allocation5], %s2190_s30 }
 0x2c2   : > { %3304 = dma.done.wait (%p3184_p1), %s2201_s28, 128  }
 0x2c3   : > { %3306 = vsyncadd (%p3184_p1), %s2201_s28, 4294967168  ;;  %s4358_s4 = sld [smem:[#allocation8_spill]]  ;;  %p24_p5 = scmp.ge.s32.totalorder %s3405_s19, 4  }
 0x2c4   : > { %s4359_s13 = smov %s3313_s14  ;;  %s4360_s14 = smov %s3317_s15 }
 0x2c5   : > { %s4362_s16 = smov %s3405_s19  ;;  %26 = sbr.rel (!%p24_p5) target bundleno = 11 (0xb), region = 108 }
 0x2c9   : > { %s4361_s15 = smov %s4358_s4 }
 0x2ca   :  { %2207 = vsyncpa [#allocation3], 1 }
 0x2cb   :  { %2209 = vsyncpa [#allocation3 + $0x1], 1 }
 0x2cc   :  { %2210 = vsyncpa [#allocation5], 1 }
 0x2cd   :  { %2212 = vsyncpa [#allocation5 + $0x1], 1 }

</bundles_post_ra>
